<compile_context>
chip_gen: v7x
topology: tpu7x:2x2x1
jax: 0.10.0
libtpu: 0.0.40
codegen_flags: <defaults>
</compile_context>

<pallas_src>
import functools

import jax
import jax.numpy as jnp
from jax.experimental import pallas as pl
from jax.experimental.pallas import tpu as pltpu

_EPS = 1e-5
_VMEM = pl.BlockSpec(memory_space=pltpu.MemorySpace.VMEM)
_SMEM = pl.BlockSpec(memory_space=pltpu.MemorySpace.SMEM)
# Explicit scoped-VMEM budget (fits the 32 MiB default on v6e/v7x, above v5e's 16 MiB).
_COMPILER_PARAMS = pltpu.CompilerParams(vmem_limit_bytes=32 * 1024 * 1024)

_INV_SQRT2 = 0.7071067811865476


def _erf(x):
    # Abramowitz & Stegun 7.1.26 (|err| < 1.5e-7): only mul/add/exp/where, guaranteed to
    # lower in Mosaic while matching nn.GELU()'s exact erf to well below f32 tolerance.
    a = jnp.abs(x)
    t = 1.0 / (1.0 + 0.3275911 * a)
    poly = t * (0.254829592 + t * (-0.284496736 + t * (1.421413741
             + t * (-1.453152027 + t * 1.061405429))))
    e = 1.0 - poly * jnp.exp(-a * a)
    return jnp.where(x >= 0.0, e, -e)


def _gelu(x):
    # exact (erf-based) GELU == nn.GELU() default
    return 0.5 * x * (1.0 + _erf(x * _INV_SQRT2))


def _lane_tile(v, reps):
    # tile a (..., C) row `reps` times along the lane (minor) axis, reshape-free
    return jnp.concatenate([v] * reps, axis=-1)


# ---------------------------------------------------------------------------
# Kernel 1: patch conv + BN1 + GELU + Attention_gc + nearest-upsample*x +
#           1x1 conv (block-diagonal 128x128 matmul) + BN2 + GELU.
# Layout: rows = (b, region), lanes = (p2, channel) -> last dim P2*C (=128 here).
# ---------------------------------------------------------------------------
def _gather_attn_react1_kernel(B, L, P2, C,
                               patches_ref, wg_ref, bg_ref, gamma1_ref, beta1_ref,
                               wk_ref, bk_ref, wr_blk_ref, br1_ref,
                               gamma2_ref, beta2_ref, fold_ref, out_ref):
    R = B * L
    ones_r = jnp.ones((1, R), jnp.float32)

    # ---- region_gather: PxP / stride-P conv as one (R, P2*C) @ (P2*C, C) matmul ----
    g0 = jnp.dot(patches_ref[...], wg_ref[...],
                 preferred_element_type=jnp.float32) + bg_ref[...]           # (R, C)

    # ---- BN1 (training-mode stats; row reductions as ones-vector MXU matmuls) ----
    mean1 = jnp.dot(ones_r, g0, preferred_element_type=jnp.float32) / R      # (1, C)
    c1 = g0 - mean1
    var1 = jnp.dot(ones_r, c1 * c1, preferred_element_type=jnp.float32) / R
    g = _gelu(c1 * (gamma1_ref[...] * jax.lax.rsqrt(var1 + _EPS)) + beta1_ref[...])

    # ---- Attention_gc: wk 1x1 conv -> softmax over regions -> context -> gate ----
    scores = jnp.dot(g, wk_ref[...], preferred_element_type=jnp.float32) + bk_ref[0, 0]
    sc = scores.reshape(B, L, 1)                 # leading-dim split only (minor dim kept)
    m = jnp.max(sc, axis=1, keepdims=True)
    e = jnp.exp(sc - m)
    p = e / jnp.sum(e, axis=1, keepdims=True)                                 # (B, L, 1)
    g3 = g.reshape(B, L, C)                      # leading-dim split only
    ctx = jnp.sum(p * g3, axis=1)                                             # (B, C)
    gate = 1.0 / (1.0 + jnp.exp(-ctx))                                        # sigmoid
    att = (gate[:, None, :] * g3).reshape(R, C)                               # (R, C)

    # ---- adaptive_avg_pool2d to (H,W) == nearest PxP upsample; multiply with x ----
    # merged-lane layout (lane = p2*C + c) => att just repeats P2x along lanes.
    y = patches_ref[...].astype(jnp.float32) * _lane_tile(att, P2)            # (R, P2*C)

    # ---- react2[0]: 1x1 conv as block-diagonal (P2*C, P2*C) matmul + BN2 + GELU ----
    z1 = jnp.dot(y.astype(wr_blk_ref.dtype), wr_blk_ref[...],
                 preferred_element_type=jnp.float32) + br1_ref[...]           # (R, P2*C)
    n2 = R * P2
    mean2 = jnp.dot(jnp.dot(ones_r, z1, preferred_element_type=jnp.float32),
                    fold_ref[...], preferred_element_type=jnp.float32) / n2   # (1, C)
    c2 = z1 - _lane_tile(mean2, P2)
    var2 = jnp.dot(jnp.dot(ones_r, c2 * c2, preferred_element_type=jnp.float32),
                   fold_ref[...], preferred_element_type=jnp.float32) / n2    # (1, C)
    scale2 = gamma2_ref[...] * jax.lax.rsqrt(var2 + _EPS)
    z1n = c2 * _lane_tile(scale2, P2) + _lane_tile(beta2_ref[...], P2)
    out_ref[...] = _gelu(z1n).astype(out_ref.dtype)                           # (R, P2*C)


# ---------------------------------------------------------------------------
# Kernel 2: 3x3 conv (padding=1) as three banded (W*C, W*C) matmuls over
#           h-shifted row slabs + BN3 + GELU.
# Layout: rows = (b, h) [input h-padded by 1], lanes = (w, channel) (=128 here).
# ---------------------------------------------------------------------------
def _conv3x3_bn_kernel(B, H, W, C,
                       zpad_ref, w3_ref, b3_ref, gamma3_ref, beta3_ref, fold_ref,
                       out_ref):
    R = B * H
    WC = W * C
    ones_r = jnp.ones((1, R), jnp.float32)

    acc = jnp.zeros((R, WC), jnp.float32)
    for dy in range(3):                                   # static, unrolled
        rows = zpad_ref[:, dy:dy + H, :].reshape(R, WC)   # merge leading dims only
        acc = acc + jnp.dot(rows, w3_ref[dy], preferred_element_type=jnp.float32)
    z2 = acc + b3_ref[...]

    n3 = R * W
    mean3 = jnp.dot(jnp.dot(ones_r, z2, preferred_element_type=jnp.float32),
                    fold_ref[...], preferred_element_type=jnp.float32) / n3   # (1, C)
    c3 = z2 - _lane_tile(mean3, W)
    var3 = jnp.dot(jnp.dot(ones_r, c3 * c3, preferred_element_type=jnp.float32),
                   fold_ref[...], preferred_element_type=jnp.float32) / n3
    scale3 = gamma3_ref[...] * jax.lax.rsqrt(var3 + _EPS)
    z2n = c3 * _lane_tile(scale3, W) + _lane_tile(beta3_ref[...], W)
    out_ref[...] = _gelu(z2n).astype(out_ref.dtype)                           # (B*H, W*C)


# ---------------------------------------------------------------------------
# Wrapper: single channels-last unfold + parameter re-layout + 2 fused pallas_calls.
# ---------------------------------------------------------------------------
@functools.partial(jax.jit, static_argnames=("patch_size", "mm_dtype"))
def region_attention_real(x, params, patch_size=4, mm_dtype=jnp.float32):
    B, C, H, W = x.shape
    P = patch_size
    nh, nw = H // P, W // P
    L = nh * nw
    P2 = P * P
    K = P2 * C            # lanes of the patch layout
    R = B * L
    WC = W * C
    f32 = jnp.float32

    # single channels-last unfold of x: (B, nh, nw, ph, pw, C).  The (R, P2*C) matmul
    # view below is a pure reshape of the same buffer -> x is unfolded/read once.
    xp = x.reshape(B, C, nh, P, nw, P).transpose(0, 2, 4, 3, 5, 1)
    patches = xp.reshape(R, K).astype(mm_dtype)

    # --- parameters re-laid-out for the kernels (all tiny, wrapper-side) ------------
    wg_mat = params["wg"].transpose(2, 3, 1, 0).reshape(K, C).astype(mm_dtype)  # (ph,pw,ci)
    bg = params["bg"].reshape(1, C).astype(f32)
    gamma1 = params["bn1_gamma"].reshape(1, C).astype(f32)
    beta1 = params["bn1_beta"].reshape(1, C).astype(f32)
    wk = params["wk"].reshape(1, C).T.astype(f32)                # (C, 1)
    bk = params["bk"].reshape(1, 1).astype(f32)                  # scalar -> SMEM

    wr = params["wr"].reshape(C, C).astype(f32)                  # (co, ci)
    wr_blk = jnp.kron(jnp.eye(P2, dtype=f32), wr.T).astype(mm_dtype)   # (P2*C, P2*C)
    br1 = jnp.tile(params["br1"].reshape(1, C).astype(f32), (1, P2))   # (1, P2*C)
    gamma2 = params["bn2_gamma"].reshape(1, C).astype(f32)
    beta2 = params["bn2_beta"].reshape(1, C).astype(f32)
    fold_a = jnp.tile(jnp.eye(C, dtype=f32), (P2, 1))            # (P2*C, C) lane->chan fold

    # 3x3 conv as three banded (W*C, W*C) matrices (one per dy tap); the zero band
    # outside |w_in - w_out| <= 1 implements the width-direction zero padding.
    w3t = jnp.transpose(params["w3"], (2, 3, 1, 0)).astype(f32)  # (ky, kx, ci, co)
    dxm = jnp.arange(W)[:, None] - jnp.arange(W)[None, :] + 1    # (w_in, w_out)
    valid = ((dxm >= 0) & (dxm <= 2)).astype(f32)
    band = w3t[:, jnp.clip(dxm, 0, 2), :, :] * valid[None, :, :, None, None]  # (3,W,W,C,C)
    w3_band = band.transpose(0, 1, 3, 2, 4).reshape(3, WC, WC).astype(mm_dtype)
    b3 = jnp.tile(params["b3"].reshape(1, C).astype(f32), (1, W))             # (1, W*C)
    gamma3 = params["bn3_gamma"].reshape(1, C).astype(f32)
    beta3 = params["bn3_beta"].reshape(1, C).astype(f32)
    fold_b = jnp.tile(jnp.eye(C, dtype=f32), (W, 1))             # (W*C, C)

    # --- kernel 1 (fused up to BN2+GELU); lane-dense (R, P2*C) output ---------------
    z1g = pl.pallas_call(
        functools.partial(_gather_attn_react1_kernel, B, L, P2, C),
        out_shape=jax.ShapeDtypeStruct((R, K), f32),
        in_specs=[_VMEM, _VMEM, _VMEM, _VMEM, _VMEM,
                  _VMEM, _SMEM, _VMEM, _VMEM, _VMEM, _VMEM, _VMEM],
        out_specs=_VMEM,
        compiler_params=_COMPILER_PARAMS,
    )(patches, wg_mat, bg, gamma1, beta1, wk, bk, wr_blk, br1, gamma2, beta2, fold_a)

    # patch layout -> spatial channels-last (wrapper-side plumbing), pad H for the
    # 3x3 conv's height taps, merge (w, c) into lanes.
    z1_sp = (z1g.reshape(B, nh, nw, P, P, C)
             .transpose(0, 1, 3, 2, 4, 5)
             .reshape(B, H, W, C))
    z1_pad = jnp.pad(z1_sp, ((0, 0), (1, 1), (0, 0), (0, 0)))
    z1_pad = z1_pad.reshape(B, H + 2, WC).astype(mm_dtype)

    # --- kernel 2 (3x3 conv + BN3 + GELU); lane-dense (B*H, W*C) output -------------
    out_rows = pl.pallas_call(
        functools.partial(_conv3x3_bn_kernel, B, H, W, C),
        out_shape=jax.ShapeDtypeStruct((B * H, WC), f32),
        in_specs=[_VMEM] * 6,
        out_specs=_VMEM,
        compiler_params=_COMPILER_PARAMS,
    )(z1_pad, w3_band, b3, gamma3, beta3, fold_b)

    # back to NCHW
    return out_rows.reshape(B, H, W, C).transpose(0, 3, 1, 2)


# ---------------------------------------------------------------------------
# Pure-JAX reference (mirrors the PyTorch forward directly, NCHW, f32)
# ---------------------------------------------------------------------------
def _bn_train(x_nchw, gamma, beta):
    m = x_nchw.mean(axis=(0, 2, 3), keepdims=True)
    v = ((x_nchw - m) ** 2).mean(axis=(0, 2, 3), keepdims=True)
    return ((x_nchw - m) * jax.lax.rsqrt(v + _EPS)
            * gamma[None, :, None, None] + beta[None, :, None, None])


def _reference(x, params, P):
    B, C, H, W = x.shape
    nh, nw = H // P, W // P
    dn = ("NCHW", "OIHW", "NCHW")
    g0 = jax.lax.conv_general_dilated(x, params["wg"], (P, P), "VALID",
                                      dimension_numbers=dn) + params["bg"][None, :, None, None]
    g = jax.nn.gelu(_bn_train(g0, params["bn1_gamma"], params["bn1_beta"]), approximate=False)
    # Attention_gc
    scores = jnp.einsum("bchw,c->bhw", g, params["wk"].reshape(C)) + params["bk"][0]
    p = jax.nn.softmax(scores.reshape(B, nh * nw), axis=-1)
    ctx = jnp.einsum("bl,bcl->bc", p, g.reshape(B, C, nh * nw))
    att = jax.nn.sigmoid(ctx)[:, :, None, None] * g
    # adaptive_avg_pool2d to (H, W) == nearest upsample (output is a multiple of input)
    att_up = jnp.repeat(jnp.repeat(att, P, axis=2), P, axis=3)
    y = att_up * x
    # react2
    z1 = jax.lax.conv_general_dilated(y, params["wr"], (1, 1), "VALID",
                                      dimension_numbers=dn) + params["br1"][None, :, None, None]
    z1 = jax.nn.gelu(_bn_train(z1, params["bn2_gamma"], params["bn2_beta"]), approximate=False)
    z2 = jax.lax.conv_general_dilated(z1, params["w3"], (1, 1), ((1, 1), (1, 1)),
                                      dimension_numbers=dn) + params["b3"][None, :, None, None]
    return jax.nn.gelu(_bn_train(z2, params["bn3_gamma"], params["bn3_beta"]), approximate=False)


if __name__ == "__main__":
    B, C, H, W, P = 2, 8, 16, 16, 4

    key = jax.random.PRNGKey(0)
    ks = jax.random.split(key, 16)
    x = jax.random.normal(ks[0], (B, C, H, W), jnp.float32)

    params = {
        "wg": 0.05 * jax.random.normal(ks[1], (C, C, P, P), jnp.float32),
        "bg": 0.05 * jax.random.normal(ks[2], (C,), jnp.float32),
        "bn1_gamma": 1.0 + 0.1 * jax.random.normal(ks[3], (C,), jnp.float32),
        "bn1_beta": 0.1 * jax.random.normal(ks[4], (C,), jnp.float32),
        "wk": 0.1 * jax.random.normal(ks[5], (1, C, 1, 1), jnp.float32),
        "bk": 0.1 * jax.random.normal(ks[6], (1,), jnp.float32),
        "wr": 0.1 * jax.random.normal(ks[7], (C, C, 1, 1), jnp.float32),
        "br1": 0.1 * jax.random.normal(ks[8], (C,), jnp.float32),
        "bn2_gamma": 1.0 + 0.1 * jax.random.normal(ks[9], (C,), jnp.float32),
        "bn2_beta": 0.1 * jax.random.normal(ks[10], (C,), jnp.float32),
        "w3": 0.1 * jax.random.normal(ks[11], (C, C, 3, 3), jnp.float32),
        "b3": 0.1 * jax.random.normal(ks[12], (C,), jnp.float32),
        "bn3_gamma": 1.0 + 0.1 * jax.random.normal(ks[13], (C,), jnp.float32),
        "bn3_beta": 0.1 * jax.random.normal(ks[14], (C,), jnp.float32),
    }

    ref = _reference(x, params, P)

    # f32 path: exact module semantics
    out = region_attention_real(x, params, patch_size=P)
    jax.block_until_ready(out)
    assert out.shape == (B, C, H, W) and out.dtype == jnp.float32
    assert jnp.allclose(out, ref, atol=2e-3, rtol=2e-3), float(jnp.max(jnp.abs(out - ref)))

    # bf16-MXU path (perf option: bf16 matmul operands, f32 accumulation / BN / GELU)
    out_bf16 = region_attention_real(x, params, patch_size=P, mm_dtype=jnp.bfloat16)
    jax.block_until_ready(out_bf16)
    assert out_bf16.shape == (B, C, H, W)
    assert bool(jnp.all(jnp.isfinite(out_bf16)))
    assert jnp.allclose(out_bf16, ref, atol=1.5e-1, rtol=1.5e-1), \
        float(jnp.max(jnp.abs(out_bf16 - ref)))

    print("KERNEL_OK")
</pallas_src>

<mosaic_0001>
module attributes {stable_mosaic.version = 11 : i64} {
  func.func @_gather_attn_react1_kernel(%arg0: memref<32x128xf32, #tpu.memory_space<vmem>>, %arg1: memref<128x8xf32, #tpu.memory_space<vmem>>, %arg2: memref<1x8xf32, #tpu.memory_space<vmem>>, %arg3: memref<1x8xf32, #tpu.memory_space<vmem>>, %arg4: memref<1x8xf32, #tpu.memory_space<vmem>>, %arg5: memref<8x1xf32, #tpu.memory_space<vmem>>, %arg6: memref<1x1xf32, #tpu.memory_space<smem>>, %arg7: memref<128x128xf32, #tpu.memory_space<vmem>>, %arg8: memref<1x128xf32, #tpu.memory_space<vmem>>, %arg9: memref<1x8xf32, #tpu.memory_space<vmem>>, %arg10: memref<1x8xf32, #tpu.memory_space<vmem>>, %arg11: memref<128x8xf32, #tpu.memory_space<vmem>>, %arg12: memref<32x128xf32, #tpu.memory_space<vmem>>) attributes {dimension_semantics = [], scalar_prefetch = 0 : i64, scratch_operands = 0 : i64, tpu.core_type = #tpu.core_type<tc>} {
    %cst = arith.constant 1.000000e+00 : f32
    %0 = vector.broadcast %cst : f32 to vector<1x32xf32>
    %c0 = arith.constant 0 : index
    %c0_0 = arith.constant 0 : index
    %1 = vector.load %arg0[%c0, %c0_0] : memref<32x128xf32, #tpu.memory_space<vmem>>, vector<32x128xf32>
    %c0_1 = arith.constant 0 : index
    %c0_2 = arith.constant 0 : index
    %2 = vector.load %arg1[%c0_1, %c0_2] : memref<128x8xf32, #tpu.memory_space<vmem>>, vector<128x8xf32>
    %cst_3 = arith.constant dense<0.000000e+00> : vector<32x8xf32>
    %3 = tpu.matmul %1, %2, %cst_3 {dimension_numbers = #tpu.dot_dimension_numbers<[1], [0], [0], [1], [0, 0, 1, 1], [], []>} : vector<32x128xf32>, vector<128x8xf32>, vector<32x8xf32> -> vector<32x8xf32>
    %c0_4 = arith.constant 0 : index
    %c0_5 = arith.constant 0 : index
    %4 = vector.load %arg2[%c0_4, %c0_5] : memref<1x8xf32, #tpu.memory_space<vmem>>, vector<1x8xf32>
    %5 = vector.broadcast %4 : vector<1x8xf32> to vector<32x8xf32>
    %6 = arith.addf %3, %5 : vector<32x8xf32>
    %cst_6 = arith.constant dense<0.000000e+00> : vector<1x8xf32>
    %7 = tpu.matmul %0, %6, %cst_6 {dimension_numbers = #tpu.dot_dimension_numbers<[1], [0], [0], [1], [0, 0, 1, 1], [], []>} : vector<1x32xf32>, vector<32x8xf32>, vector<1x8xf32> -> vector<1x8xf32>
    %cst_7 = arith.constant 3.200000e+01 : f32
    %8 = vector.broadcast %cst_7 : f32 to vector<1x8xf32>
    %9 = arith.divf %7, %8 : vector<1x8xf32>
    %10 = vector.broadcast %9 : vector<1x8xf32> to vector<32x8xf32>
    %11 = arith.subf %6, %10 : vector<32x8xf32>
    %12 = arith.mulf %11, %11 : vector<32x8xf32>
    %cst_8 = arith.constant dense<0.000000e+00> : vector<1x8xf32>
    %13 = tpu.matmul %0, %12, %cst_8 {dimension_numbers = #tpu.dot_dimension_numbers<[1], [0], [0], [1], [0, 0, 1, 1], [], []>} : vector<1x32xf32>, vector<32x8xf32>, vector<1x8xf32> -> vector<1x8xf32>
    %cst_9 = arith.constant 3.200000e+01 : f32
    %14 = vector.broadcast %cst_9 : f32 to vector<1x8xf32>
    %15 = arith.divf %13, %14 : vector<1x8xf32>
    %c0_10 = arith.constant 0 : index
    %c0_11 = arith.constant 0 : index
    %16 = vector.load %arg3[%c0_10, %c0_11] : memref<1x8xf32, #tpu.memory_space<vmem>>, vector<1x8xf32>
    %cst_12 = arith.constant 9.99999974E-6 : f32
    %17 = vector.broadcast %cst_12 : f32 to vector<1x8xf32>
    %18 = arith.addf %15, %17 : vector<1x8xf32>
    %19 = math.rsqrt %18 : vector<1x8xf32>
    %20 = arith.mulf %16, %19 : vector<1x8xf32>
    %21 = vector.broadcast %20 : vector<1x8xf32> to vector<32x8xf32>
    %22 = arith.mulf %11, %21 : vector<32x8xf32>
    %c0_13 = arith.constant 0 : index
    %c0_14 = arith.constant 0 : index
    %23 = vector.load %arg4[%c0_13, %c0_14] : memref<1x8xf32, #tpu.memory_space<vmem>>, vector<1x8xf32>
    %24 = vector.broadcast %23 : vector<1x8xf32> to vector<32x8xf32>
    %25 = arith.addf %22, %24 : vector<32x8xf32>
    %cst_15 = arith.constant 5.000000e-01 : f32
    %26 = vector.broadcast %cst_15 : f32 to vector<32x8xf32>
    %27 = arith.mulf %26, %25 : vector<32x8xf32>
    %cst_16 = arith.constant 0.707106769 : f32
    %28 = vector.broadcast %cst_16 : f32 to vector<32x8xf32>
    %29 = arith.mulf %25, %28 : vector<32x8xf32>
    %30 = math.absf %29 : vector<32x8xf32>
    %cst_17 = arith.constant 0.327591091 : f32
    %31 = vector.broadcast %cst_17 : f32 to vector<32x8xf32>
    %32 = arith.mulf %31, %30 : vector<32x8xf32>
    %cst_18 = arith.constant 1.000000e+00 : f32
    %33 = vector.broadcast %cst_18 : f32 to vector<32x8xf32>
    %34 = arith.addf %33, %32 : vector<32x8xf32>
    %cst_19 = arith.constant 1.000000e+00 : f32
    %35 = vector.broadcast %cst_19 : f32 to vector<32x8xf32>
    %36 = arith.divf %35, %34 : vector<32x8xf32>
    %cst_20 = arith.constant 1.06140542 : f32
    %37 = vector.broadcast %cst_20 : f32 to vector<32x8xf32>
    %38 = arith.mulf %36, %37 : vector<32x8xf32>
    %cst_21 = arith.constant -1.45315206 : f32
    %39 = vector.broadcast %cst_21 : f32 to vector<32x8xf32>
    %40 = arith.addf %39, %38 : vector<32x8xf32>
    %41 = arith.mulf %36, %40 : vector<32x8xf32>
    %cst_22 = arith.constant 1.42141378 : f32
    %42 = vector.broadcast %cst_22 : f32 to vector<32x8xf32>
    %43 = arith.addf %42, %41 : vector<32x8xf32>
    %44 = arith.mulf %36, %43 : vector<32x8xf32>
    %cst_23 = arith.constant -0.284496725 : f32
    %45 = vector.broadcast %cst_23 : f32 to vector<32x8xf32>
    %46 = arith.addf %45, %44 : vector<32x8xf32>
    %47 = arith.mulf %36, %46 : vector<32x8xf32>
    %cst_24 = arith.constant 0.254829586 : f32
    %48 = vector.broadcast %cst_24 : f32 to vector<32x8xf32>
    %49 = arith.addf %48, %47 : vector<32x8xf32>
    %50 = arith.mulf %36, %49 : vector<32x8xf32>
    %cst_25 = arith.constant 0.000000e+00 : f32
    %51 = vector.broadcast %cst_25 : f32 to vector<32x8xf32>
    %52 = arith.subf %51, %30 : vector<32x8xf32>
    %53 = arith.mulf %52, %30 : vector<32x8xf32>
    %54 = math.exp %53 : vector<32x8xf32>
    %55 = arith.mulf %50, %54 : vector<32x8xf32>
    %cst_26 = arith.constant 1.000000e+00 : f32
    %56 = vector.broadcast %cst_26 : f32 to vector<32x8xf32>
    %57 = arith.subf %56, %55 : vector<32x8xf32>
    %cst_27 = arith.constant 0.000000e+00 : f32
    %58 = vector.broadcast %cst_27 : f32 to vector<32x8xf32>
    %59 = arith.cmpf oge, %29, %58 : vector<32x8xf32>
    %cst_28 = arith.constant 0.000000e+00 : f32
    %60 = vector.broadcast %cst_28 : f32 to vector<32x8xf32>
    %61 = arith.subf %60, %57 : vector<32x8xf32>
    %62 = arith.select %59, %57, %61 : vector<32x8xi1>, vector<32x8xf32>
    %cst_29 = arith.constant 1.000000e+00 : f32
    %63 = vector.broadcast %cst_29 : f32 to vector<32x8xf32>
    %64 = arith.addf %63, %62 : vector<32x8xf32>
    %65 = arith.mulf %27, %64 : vector<32x8xf32>
    %c0_30 = arith.constant 0 : index
    %c0_31 = arith.constant 0 : index
    %66 = vector.load %arg5[%c0_30, %c0_31] : memref<8x1xf32, #tpu.memory_space<vmem>>, vector<8x1xf32>
    %cst_32 = arith.constant dense<0.000000e+00> : vector<32x1xf32>
    %67 = tpu.matmul %65, %66, %cst_32 {dimension_numbers = #tpu.dot_dimension_numbers<[1], [0], [0], [1], [0, 0, 1, 1], [], []>} : vector<32x8xf32>, vector<8x1xf32>, vector<32x1xf32> -> vector<32x1xf32>
    %c0_33 = arith.constant 0 : index
    %c0_34 = arith.constant 0 : index
    %68 = memref.load %arg6[%c0_33, %c0_34] : memref<1x1xf32, #tpu.memory_space<smem>>
    %69 = vector.broadcast %68 : f32 to vector<32x1xf32>
    %70 = arith.addf %67, %69 : vector<32x1xf32>
    %71 = vector.shape_cast %70 : vector<32x1xf32> to vector<2x16x1xf32>
    %cst_35 = arith.constant dense<0xFF800000> : vector<2x1xf32>
    %72 = vector.multi_reduction <maximumf>, %71, %cst_35 [1] : vector<2x16x1xf32> to vector<2x1xf32>
    %73 = vector.shape_cast %72 : vector<2x1xf32> to vector<2x1x1xf32>
    %74 = vector.broadcast %73 : vector<2x1x1xf32> to vector<2x16x1xf32>
    %75 = arith.subf %71, %74 : vector<2x16x1xf32>
    %76 = math.exp %75 : vector<2x16x1xf32>
    %cst_36 = arith.constant dense<0.000000e+00> : vector<2x1xf32>
    %77 = vector.multi_reduction <add>, %76, %cst_36 [1] : vector<2x16x1xf32> to vector<2x1xf32>
    %78 = vector.shape_cast %77 : vector<2x1xf32> to vector<2x1x1xf32>
    %79 = vector.broadcast %78 : vector<2x1x1xf32> to vector<2x16x1xf32>
    %80 = arith.divf %76, %79 : vector<2x16x1xf32>
    %81 = vector.shape_cast %65 : vector<32x8xf32> to vector<2x16x8xf32>
    %82 = vector.broadcast %80 : vector<2x16x1xf32> to vector<2x16x8xf32>
    %83 = arith.mulf %82, %81 : vector<2x16x8xf32>
    %cst_37 = arith.constant dense<0.000000e+00> : vector<2x8xf32>
    %84 = vector.multi_reduction <add>, %83, %cst_37 [1] : vector<2x16x8xf32> to vector<2x8xf32>
    %cst_38 = arith.constant 0.000000e+00 : f32
    %85 = vector.broadcast %cst_38 : f32 to vector<2x8xf32>
    %86 = arith.subf %85, %84 : vector<2x8xf32>
    %87 = math.exp %86 : vector<2x8xf32>
    %cst_39 = arith.constant 1.000000e+00 : f32
    %88 = vector.broadcast %cst_39 : f32 to vector<2x8xf32>
    %89 = arith.addf %88, %87 : vector<2x8xf32>
    %cst_40 = arith.constant 1.000000e+00 : f32
    %90 = vector.broadcast %cst_40 : f32 to vector<2x8xf32>
    %91 = arith.divf %90, %89 : vector<2x8xf32>
    %92 = vector.shape_cast %91 : vector<2x8xf32> to vector<2x1x8xf32>
    %93 = vector.broadcast %92 : vector<2x1x8xf32> to vector<2x16x8xf32>
    %94 = arith.mulf %93, %81 : vector<2x16x8xf32>
    %95 = vector.shape_cast %94 : vector<2x16x8xf32> to vector<32x8xf32>
    %c0_41 = arith.constant 0 : index
    %c0_42 = arith.constant 0 : index
    %96 = vector.load %arg0[%c0_41, %c0_42] : memref<32x128xf32, #tpu.memory_space<vmem>>, vector<32x128xf32>
    %97 = tpu.concatenate %95, %95, %95, %95, %95, %95, %95, %95, %95, %95, %95, %95, %95, %95, %95, %95 in 1 : vector<32x8xf32>, vector<32x8xf32>, vector<32x8xf32>, vector<32x8xf32>, vector<32x8xf32>, vector<32x8xf32>, vector<32x8xf32>, vector<32x8xf32>, vector<32x8xf32>, vector<32x8xf32>, vector<32x8xf32>, vector<32x8xf32>, vector<32x8xf32>, vector<32x8xf32>, vector<32x8xf32>, vector<32x8xf32> -> vector<32x128xf32>
    %98 = arith.mulf %96, %97 : vector<32x128xf32>
    %c0_43 = arith.constant 0 : index
    %c0_44 = arith.constant 0 : index
    %99 = vector.load %arg7[%c0_43, %c0_44] : memref<128x128xf32, #tpu.memory_space<vmem>>, vector<128x128xf32>
    %cst_45 = arith.constant dense<0.000000e+00> : vector<32x128xf32>
    %100 = tpu.matmul %98, %99, %cst_45 {dimension_numbers = #tpu.dot_dimension_numbers<[1], [0], [0], [1], [0, 0, 1, 1], [], []>} : vector<32x128xf32>, vector<128x128xf32>, vector<32x128xf32> -> vector<32x128xf32>
    %c0_46 = arith.constant 0 : index
    %c0_47 = arith.constant 0 : index
    %101 = vector.load %arg8[%c0_46, %c0_47] : memref<1x128xf32, #tpu.memory_space<vmem>>, vector<1x128xf32>
    %102 = vector.broadcast %101 : vector<1x128xf32> to vector<32x128xf32>
    %103 = arith.addf %100, %102 : vector<32x128xf32>
    %cst_48 = arith.constant dense<0.000000e+00> : vector<1x128xf32>
    %104 = tpu.matmul %0, %103, %cst_48 {dimension_numbers = #tpu.dot_dimension_numbers<[1], [0], [0], [1], [0, 0, 1, 1], [], []>} : vector<1x32xf32>, vector<32x128xf32>, vector<1x128xf32> -> vector<1x128xf32>
    %c0_49 = arith.constant 0 : index
    %c0_50 = arith.constant 0 : index
    %105 = vector.load %arg11[%c0_49, %c0_50] : memref<128x8xf32, #tpu.memory_space<vmem>>, vector<128x8xf32>
    %cst_51 = arith.constant dense<0.000000e+00> : vector<1x8xf32>
    %106 = tpu.matmul %104, %105, %cst_51 {dimension_numbers = #tpu.dot_dimension_numbers<[1], [0], [0], [1], [0, 0, 1, 1], [], []>} : vector<1x128xf32>, vector<128x8xf32>, vector<1x8xf32> -> vector<1x8xf32>
    %cst_52 = arith.constant 5.120000e+02 : f32
    %107 = vector.broadcast %cst_52 : f32 to vector<1x8xf32>
    %108 = arith.divf %106, %107 : vector<1x8xf32>
    %109 = tpu.concatenate %108, %108, %108, %108, %108, %108, %108, %108, %108, %108, %108, %108, %108, %108, %108, %108 in 1 : vector<1x8xf32>, vector<1x8xf32>, vector<1x8xf32>, vector<1x8xf32>, vector<1x8xf32>, vector<1x8xf32>, vector<1x8xf32>, vector<1x8xf32>, vector<1x8xf32>, vector<1x8xf32>, vector<1x8xf32>, vector<1x8xf32>, vector<1x8xf32>, vector<1x8xf32>, vector<1x8xf32>, vector<1x8xf32> -> vector<1x128xf32>
    %110 = vector.broadcast %109 : vector<1x128xf32> to vector<32x128xf32>
    %111 = arith.subf %103, %110 : vector<32x128xf32>
    %112 = arith.mulf %111, %111 : vector<32x128xf32>
    %cst_53 = arith.constant dense<0.000000e+00> : vector<1x128xf32>
    %113 = tpu.matmul %0, %112, %cst_53 {dimension_numbers = #tpu.dot_dimension_numbers<[1], [0], [0], [1], [0, 0, 1, 1], [], []>} : vector<1x32xf32>, vector<32x128xf32>, vector<1x128xf32> -> vector<1x128xf32>
    %c0_54 = arith.constant 0 : index
    %c0_55 = arith.constant 0 : index
    %114 = vector.load %arg11[%c0_54, %c0_55] : memref<128x8xf32, #tpu.memory_space<vmem>>, vector<128x8xf32>
    %cst_56 = arith.constant dense<0.000000e+00> : vector<1x8xf32>
    %115 = tpu.matmul %113, %114, %cst_56 {dimension_numbers = #tpu.dot_dimension_numbers<[1], [0], [0], [1], [0, 0, 1, 1], [], []>} : vector<1x128xf32>, vector<128x8xf32>, vector<1x8xf32> -> vector<1x8xf32>
    %cst_57 = arith.constant 5.120000e+02 : f32
    %116 = vector.broadcast %cst_57 : f32 to vector<1x8xf32>
    %117 = arith.divf %115, %116 : vector<1x8xf32>
    %c0_58 = arith.constant 0 : index
    %c0_59 = arith.constant 0 : index
    %118 = vector.load %arg9[%c0_58, %c0_59] : memref<1x8xf32, #tpu.memory_space<vmem>>, vector<1x8xf32>
    %cst_60 = arith.constant 9.99999974E-6 : f32
    %119 = vector.broadcast %cst_60 : f32 to vector<1x8xf32>
    %120 = arith.addf %117, %119 : vector<1x8xf32>
    %121 = math.rsqrt %120 : vector<1x8xf32>
    %122 = arith.mulf %118, %121 : vector<1x8xf32>
    %123 = tpu.concatenate %122, %122, %122, %122, %122, %122, %122, %122, %122, %122, %122, %122, %122, %122, %122, %122 in 1 : vector<1x8xf32>, vector<1x8xf32>, vector<1x8xf32>, vector<1x8xf32>, vector<1x8xf32>, vector<1x8xf32>, vector<1x8xf32>, vector<1x8xf32>, vector<1x8xf32>, vector<1x8xf32>, vector<1x8xf32>, vector<1x8xf32>, vector<1x8xf32>, vector<1x8xf32>, vector<1x8xf32>, vector<1x8xf32> -> vector<1x128xf32>
    %124 = vector.broadcast %123 : vector<1x128xf32> to vector<32x128xf32>
    %125 = arith.mulf %111, %124 : vector<32x128xf32>
    %c0_61 = arith.constant 0 : index
    %c0_62 = arith.constant 0 : index
    %126 = vector.load %arg10[%c0_61, %c0_62] : memref<1x8xf32, #tpu.memory_space<vmem>>, vector<1x8xf32>
    %127 = tpu.concatenate %126, %126, %126, %126, %126, %126, %126, %126, %126, %126, %126, %126, %126, %126, %126, %126 in 1 : vector<1x8xf32>, vector<1x8xf32>, vector<1x8xf32>, vector<1x8xf32>, vector<1x8xf32>, vector<1x8xf32>, vector<1x8xf32>, vector<1x8xf32>, vector<1x8xf32>, vector<1x8xf32>, vector<1x8xf32>, vector<1x8xf32>, vector<1x8xf32>, vector<1x8xf32>, vector<1x8xf32>, vector<1x8xf32> -> vector<1x128xf32>
    %128 = vector.broadcast %127 : vector<1x128xf32> to vector<32x128xf32>
    %129 = arith.addf %125, %128 : vector<32x128xf32>
    %cst_63 = arith.constant 5.000000e-01 : f32
    %130 = vector.broadcast %cst_63 : f32 to vector<32x128xf32>
    %131 = arith.mulf %130, %129 : vector<32x128xf32>
    %cst_64 = arith.constant 0.707106769 : f32
    %132 = vector.broadcast %cst_64 : f32 to vector<32x128xf32>
    %133 = arith.mulf %129, %132 : vector<32x128xf32>
    %134 = math.absf %133 : vector<32x128xf32>
    %cst_65 = arith.constant 0.327591091 : f32
    %135 = vector.broadcast %cst_65 : f32 to vector<32x128xf32>
    %136 = arith.mulf %135, %134 : vector<32x128xf32>
    %cst_66 = arith.constant 1.000000e+00 : f32
    %137 = vector.broadcast %cst_66 : f32 to vector<32x128xf32>
    %138 = arith.addf %137, %136 : vector<32x128xf32>
    %cst_67 = arith.constant 1.000000e+00 : f32
    %139 = vector.broadcast %cst_67 : f32 to vector<32x128xf32>
    %140 = arith.divf %139, %138 : vector<32x128xf32>
    %cst_68 = arith.constant 1.06140542 : f32
    %141 = vector.broadcast %cst_68 : f32 to vector<32x128xf32>
    %142 = arith.mulf %140, %141 : vector<32x128xf32>
    %cst_69 = arith.constant -1.45315206 : f32
    %143 = vector.broadcast %cst_69 : f32 to vector<32x128xf32>
    %144 = arith.addf %143, %142 : vector<32x128xf32>
    %145 = arith.mulf %140, %144 : vector<32x128xf32>
    %cst_70 = arith.constant 1.42141378 : f32
    %146 = vector.broadcast %cst_70 : f32 to vector<32x128xf32>
    %147 = arith.addf %146, %145 : vector<32x128xf32>
    %148 = arith.mulf %140, %147 : vector<32x128xf32>
    %cst_71 = arith.constant -0.284496725 : f32
    %149 = vector.broadcast %cst_71 : f32 to vector<32x128xf32>
    %150 = arith.addf %149, %148 : vector<32x128xf32>
    %151 = arith.mulf %140, %150 : vector<32x128xf32>
    %cst_72 = arith.constant 0.254829586 : f32
    %152 = vector.broadcast %cst_72 : f32 to vector<32x128xf32>
    %153 = arith.addf %152, %151 : vector<32x128xf32>
    %154 = arith.mulf %140, %153 : vector<32x128xf32>
    %cst_73 = arith.constant 0.000000e+00 : f32
    %155 = vector.broadcast %cst_73 : f32 to vector<32x128xf32>
    %156 = arith.subf %155, %134 : vector<32x128xf32>
    %157 = arith.mulf %156, %134 : vector<32x128xf32>
    %158 = math.exp %157 : vector<32x128xf32>
    %159 = arith.mulf %154, %158 : vector<32x128xf32>
    %cst_74 = arith.constant 1.000000e+00 : f32
    %160 = vector.broadcast %cst_74 : f32 to vector<32x128xf32>
    %161 = arith.subf %160, %159 : vector<32x128xf32>
    %cst_75 = arith.constant 0.000000e+00 : f32
    %162 = vector.broadcast %cst_75 : f32 to vector<32x128xf32>
    %163 = arith.cmpf oge, %133, %162 : vector<32x128xf32>
    %cst_76 = arith.constant 0.000000e+00 : f32
    %164 = vector.broadcast %cst_76 : f32 to vector<32x128xf32>
    %165 = arith.subf %164, %161 : vector<32x128xf32>
    %166 = arith.select %163, %161, %165 : vector<32x128xi1>, vector<32x128xf32>
    %cst_77 = arith.constant 1.000000e+00 : f32
    %167 = vector.broadcast %cst_77 : f32 to vector<32x128xf32>
    %168 = arith.addf %167, %166 : vector<32x128xf32>
    %169 = arith.mulf %131, %168 : vector<32x128xf32>
    %c0_78 = arith.constant 0 : index
    %c0_79 = arith.constant 0 : index
    %170 = vector.load %arg12[%c0_78, %c0_79] : memref<32x128xf32, #tpu.memory_space<vmem>>, vector<32x128xf32>
    tpu.vector_store %arg12[%c0_78, %c0_79], %169 {strides = array<i32>} : memref<32x128xf32, #tpu.memory_space<vmem>>, vector<32x128xf32>,
    return
  }
}

module attributes {stable_mosaic.version = 11 : i64} {
  func.func @_conv3x3_bn_kernel(%arg0: memref<2x18x128xf32, #tpu.memory_space<vmem>>, %arg1: memref<3x128x128xf32, #tpu.memory_space<vmem>>, %arg2: memref<1x128xf32, #tpu.memory_space<vmem>>, %arg3: memref<1x8xf32, #tpu.memory_space<vmem>>, %arg4: memref<1x8xf32, #tpu.memory_space<vmem>>, %arg5: memref<128x8xf32, #tpu.memory_space<vmem>>, %arg6: memref<32x128xf32, #tpu.memory_space<vmem>>) attributes {dimension_semantics = [], scalar_prefetch = 0 : i64, scratch_operands = 0 : i64, tpu.core_type = #tpu.core_type<tc>} {
    %cst = arith.constant 1.000000e+00 : f32
    %0 = vector.broadcast %cst : f32 to vector<1x32xf32>
    %cst_0 = arith.constant 0.000000e+00 : f32
    %1 = vector.broadcast %cst_0 : f32 to vector<32x128xf32>
    %c0 = arith.constant 0 : index
    %c0_1 = arith.constant 0 : index
    %c0_2 = arith.constant 0 : index
    %2 = vector.load %arg0[%c0, %c0_1, %c0_2] : memref<2x18x128xf32, #tpu.memory_space<vmem>>, vector<2x16x128xf32>
    %3 = vector.shape_cast %2 : vector<2x16x128xf32> to vector<32x128xf32>
    %c0_3 = arith.constant 0 : index
    %c0_4 = arith.constant 0 : index
    %c0_5 = arith.constant 0 : index
    %4 = vector.load %arg1[%c0_3, %c0_4, %c0_5] : memref<3x128x128xf32, #tpu.memory_space<vmem>>, vector<1x128x128xf32>
    %5 = vector.shape_cast %4 : vector<1x128x128xf32> to vector<128x128xf32>
    %cst_6 = arith.constant dense<0.000000e+00> : vector<32x128xf32>
    %6 = tpu.matmul %3, %5, %cst_6 {dimension_numbers = #tpu.dot_dimension_numbers<[1], [0], [0], [1], [0, 0, 1, 1], [], []>} : vector<32x128xf32>, vector<128x128xf32>, vector<32x128xf32> -> vector<32x128xf32>
    %7 = arith.addf %1, %6 : vector<32x128xf32>
    %c0_7 = arith.constant 0 : index
    %c1 = arith.constant 1 : index
    %c0_8 = arith.constant 0 : index
    %8 = vector.load %arg0[%c0_7, %c1, %c0_8] : memref<2x18x128xf32, #tpu.memory_space<vmem>>, vector<2x16x128xf32>
    %9 = vector.shape_cast %8 : vector<2x16x128xf32> to vector<32x128xf32>
    %c1_9 = arith.constant 1 : index
    %c0_10 = arith.constant 0 : index
    %c0_11 = arith.constant 0 : index
    %10 = vector.load %arg1[%c1_9, %c0_10, %c0_11] : memref<3x128x128xf32, #tpu.memory_space<vmem>>, vector<1x128x128xf32>
    %11 = vector.shape_cast %10 : vector<1x128x128xf32> to vector<128x128xf32>
    %cst_12 = arith.constant dense<0.000000e+00> : vector<32x128xf32>
    %12 = tpu.matmul %9, %11, %cst_12 {dimension_numbers = #tpu.dot_dimension_numbers<[1], [0], [0], [1], [0, 0, 1, 1], [], []>} : vector<32x128xf32>, vector<128x128xf32>, vector<32x128xf32> -> vector<32x128xf32>
    %13 = arith.addf %7, %12 : vector<32x128xf32>
    %c0_13 = arith.constant 0 : index
    %c2 = arith.constant 2 : index
    %c0_14 = arith.constant 0 : index
    %14 = vector.load %arg0[%c0_13, %c2, %c0_14] : memref<2x18x128xf32, #tpu.memory_space<vmem>>, vector<2x16x128xf32>
    %15 = vector.shape_cast %14 : vector<2x16x128xf32> to vector<32x128xf32>
    %c2_15 = arith.constant 2 : index
    %c0_16 = arith.constant 0 : index
    %c0_17 = arith.constant 0 : index
    %16 = vector.load %arg1[%c2_15, %c0_16, %c0_17] : memref<3x128x128xf32, #tpu.memory_space<vmem>>, vector<1x128x128xf32>
    %17 = vector.shape_cast %16 : vector<1x128x128xf32> to vector<128x128xf32>
    %cst_18 = arith.constant dense<0.000000e+00> : vector<32x128xf32>
    %18 = tpu.matmul %15, %17, %cst_18 {dimension_numbers = #tpu.dot_dimension_numbers<[1], [0], [0], [1], [0, 0, 1, 1], [], []>} : vector<32x128xf32>, vector<128x128xf32>, vector<32x128xf32> -> vector<32x128xf32>
    %19 = arith.addf %13, %18 : vector<32x128xf32>
    %c0_19 = arith.constant 0 : index
    %c0_20 = arith.constant 0 : index
    %20 = vector.load %arg2[%c0_19, %c0_20] : memref<1x128xf32, #tpu.memory_space<vmem>>, vector<1x128xf32>
    %21 = vector.broadcast %20 : vector<1x128xf32> to vector<32x128xf32>
    %22 = arith.addf %19, %21 : vector<32x128xf32>
    %cst_21 = arith.constant dense<0.000000e+00> : vector<1x128xf32>
    %23 = tpu.matmul %0, %22, %cst_21 {dimension_numbers = #tpu.dot_dimension_numbers<[1], [0], [0], [1], [0, 0, 1, 1], [], []>} : vector<1x32xf32>, vector<32x128xf32>, vector<1x128xf32> -> vector<1x128xf32>
    %c0_22 = arith.constant 0 : index
    %c0_23 = arith.constant 0 : index
    %24 = vector.load %arg5[%c0_22, %c0_23] : memref<128x8xf32, #tpu.memory_space<vmem>>, vector<128x8xf32>
    %cst_24 = arith.constant dense<0.000000e+00> : vector<1x8xf32>
    %25 = tpu.matmul %23, %24, %cst_24 {dimension_numbers = #tpu.dot_dimension_numbers<[1], [0], [0], [1], [0, 0, 1, 1], [], []>} : vector<1x128xf32>, vector<128x8xf32>, vector<1x8xf32> -> vector<1x8xf32>
    %cst_25 = arith.constant 5.120000e+02 : f32
    %26 = vector.broadcast %cst_25 : f32 to vector<1x8xf32>
    %27 = arith.divf %25, %26 : vector<1x8xf32>
    %28 = tpu.concatenate %27, %27, %27, %27, %27, %27, %27, %27, %27, %27, %27, %27, %27, %27, %27, %27 in 1 : vector<1x8xf32>, vector<1x8xf32>, vector<1x8xf32>, vector<1x8xf32>, vector<1x8xf32>, vector<1x8xf32>, vector<1x8xf32>, vector<1x8xf32>, vector<1x8xf32>, vector<1x8xf32>, vector<1x8xf32>, vector<1x8xf32>, vector<1x8xf32>, vector<1x8xf32>, vector<1x8xf32>, vector<1x8xf32> -> vector<1x128xf32>
    %29 = vector.broadcast %28 : vector<1x128xf32> to vector<32x128xf32>
    %30 = arith.subf %22, %29 : vector<32x128xf32>
    %31 = arith.mulf %30, %30 : vector<32x128xf32>
    %cst_26 = arith.constant dense<0.000000e+00> : vector<1x128xf32>
    %32 = tpu.matmul %0, %31, %cst_26 {dimension_numbers = #tpu.dot_dimension_numbers<[1], [0], [0], [1], [0, 0, 1, 1], [], []>} : vector<1x32xf32>, vector<32x128xf32>, vector<1x128xf32> -> vector<1x128xf32>
    %c0_27 = arith.constant 0 : index
    %c0_28 = arith.constant 0 : index
    %33 = vector.load %arg5[%c0_27, %c0_28] : memref<128x8xf32, #tpu.memory_space<vmem>>, vector<128x8xf32>
    %cst_29 = arith.constant dense<0.000000e+00> : vector<1x8xf32>
    %34 = tpu.matmul %32, %33, %cst_29 {dimension_numbers = #tpu.dot_dimension_numbers<[1], [0], [0], [1], [0, 0, 1, 1], [], []>} : vector<1x128xf32>, vector<128x8xf32>, vector<1x8xf32> -> vector<1x8xf32>
    %cst_30 = arith.constant 5.120000e+02 : f32
    %35 = vector.broadcast %cst_30 : f32 to vector<1x8xf32>
    %36 = arith.divf %34, %35 : vector<1x8xf32>
    %c0_31 = arith.constant 0 : index
    %c0_32 = arith.constant 0 : index
    %37 = vector.load %arg3[%c0_31, %c0_32] : memref<1x8xf32, #tpu.memory_space<vmem>>, vector<1x8xf32>
    %cst_33 = arith.constant 9.99999974E-6 : f32
    %38 = vector.broadcast %cst_33 : f32 to vector<1x8xf32>
    %39 = arith.addf %36, %38 : vector<1x8xf32>
    %40 = math.rsqrt %39 : vector<1x8xf32>
    %41 = arith.mulf %37, %40 : vector<1x8xf32>
    %42 = tpu.concatenate %41, %41, %41, %41, %41, %41, %41, %41, %41, %41, %41, %41, %41, %41, %41, %41 in 1 : vector<1x8xf32>, vector<1x8xf32>, vector<1x8xf32>, vector<1x8xf32>, vector<1x8xf32>, vector<1x8xf32>, vector<1x8xf32>, vector<1x8xf32>, vector<1x8xf32>, vector<1x8xf32>, vector<1x8xf32>, vector<1x8xf32>, vector<1x8xf32>, vector<1x8xf32>, vector<1x8xf32>, vector<1x8xf32> -> vector<1x128xf32>
    %43 = vector.broadcast %42 : vector<1x128xf32> to vector<32x128xf32>
    %44 = arith.mulf %30, %43 : vector<32x128xf32>
    %c0_34 = arith.constant 0 : index
    %c0_35 = arith.constant 0 : index
    %45 = vector.load %arg4[%c0_34, %c0_35] : memref<1x8xf32, #tpu.memory_space<vmem>>, vector<1x8xf32>
    %46 = tpu.concatenate %45, %45, %45, %45, %45, %45, %45, %45, %45, %45, %45, %45, %45, %45, %45, %45 in 1 : vector<1x8xf32>, vector<1x8xf32>, vector<1x8xf32>, vector<1x8xf32>, vector<1x8xf32>, vector<1x8xf32>, vector<1x8xf32>, vector<1x8xf32>, vector<1x8xf32>, vector<1x8xf32>, vector<1x8xf32>, vector<1x8xf32>, vector<1x8xf32>, vector<1x8xf32>, vector<1x8xf32>, vector<1x8xf32> -> vector<1x128xf32>
    %47 = vector.broadcast %46 : vector<1x128xf32> to vector<32x128xf32>
    %48 = arith.addf %44, %47 : vector<32x128xf32>
    %cst_36 = arith.constant 5.000000e-01 : f32
    %49 = vector.broadcast %cst_36 : f32 to vector<32x128xf32>
    %50 = arith.mulf %49, %48 : vector<32x128xf32>
    %cst_37 = arith.constant 0.707106769 : f32
    %51 = vector.broadcast %cst_37 : f32 to vector<32x128xf32>
    %52 = arith.mulf %48, %51 : vector<32x128xf32>
    %53 = math.absf %52 : vector<32x128xf32>
    %cst_38 = arith.constant 0.327591091 : f32
    %54 = vector.broadcast %cst_38 : f32 to vector<32x128xf32>
    %55 = arith.mulf %54, %53 : vector<32x128xf32>
    %cst_39 = arith.constant 1.000000e+00 : f32
    %56 = vector.broadcast %cst_39 : f32 to vector<32x128xf32>
    %57 = arith.addf %56, %55 : vector<32x128xf32>
    %cst_40 = arith.constant 1.000000e+00 : f32
    %58 = vector.broadcast %cst_40 : f32 to vector<32x128xf32>
    %59 = arith.divf %58, %57 : vector<32x128xf32>
    %cst_41 = arith.constant 1.06140542 : f32
    %60 = vector.broadcast %cst_41 : f32 to vector<32x128xf32>
    %61 = arith.mulf %59, %60 : vector<32x128xf32>
    %cst_42 = arith.constant -1.45315206 : f32
    %62 = vector.broadcast %cst_42 : f32 to vector<32x128xf32>
    %63 = arith.addf %62, %61 : vector<32x128xf32>
    %64 = arith.mulf %59, %63 : vector<32x128xf32>
    %cst_43 = arith.constant 1.42141378 : f32
    %65 = vector.broadcast %cst_43 : f32 to vector<32x128xf32>
    %66 = arith.addf %65, %64 : vector<32x128xf32>
    %67 = arith.mulf %59, %66 : vector<32x128xf32>
    %cst_44 = arith.constant -0.284496725 : f32
    %68 = vector.broadcast %cst_44 : f32 to vector<32x128xf32>
    %69 = arith.addf %68, %67 : vector<32x128xf32>
    %70 = arith.mulf %59, %69 : vector<32x128xf32>
    %cst_45 = arith.constant 0.254829586 : f32
    %71 = vector.broadcast %cst_45 : f32 to vector<32x128xf32>
    %72 = arith.addf %71, %70 : vector<32x128xf32>
    %73 = arith.mulf %59, %72 : vector<32x128xf32>
    %cst_46 = arith.constant 0.000000e+00 : f32
    %74 = vector.broadcast %cst_46 : f32 to vector<32x128xf32>
    %75 = arith.subf %74, %53 : vector<32x128xf32>
    %76 = arith.mulf %75, %53 : vector<32x128xf32>
    %77 = math.exp %76 : vector<32x128xf32>
    %78 = arith.mulf %73, %77 : vector<32x128xf32>
    %cst_47 = arith.constant 1.000000e+00 : f32
    %79 = vector.broadcast %cst_47 : f32 to vector<32x128xf32>
    %80 = arith.subf %79, %78 : vector<32x128xf32>
    %cst_48 = arith.constant 0.000000e+00 : f32
    %81 = vector.broadcast %cst_48 : f32 to vector<32x128xf32>
    %82 = arith.cmpf oge, %52, %81 : vector<32x128xf32>
    %cst_49 = arith.constant 0.000000e+00 : f32
    %83 = vector.broadcast %cst_49 : f32 to vector<32x128xf32>
    %84 = arith.subf %83, %80 : vector<32x128xf32>
    %85 = arith.select %82, %80, %84 : vector<32x128xi1>, vector<32x128xf32>
    %cst_50 = arith.constant 1.000000e+00 : f32
    %86 = vector.broadcast %cst_50 : f32 to vector<32x128xf32>
    %87 = arith.addf %86, %85 : vector<32x128xf32>
    %88 = arith.mulf %50, %87 : vector<32x128xf32>
    %c0_51 = arith.constant 0 : index
    %c0_52 = arith.constant 0 : index
    %89 = vector.load %arg6[%c0_51, %c0_52] : memref<32x128xf32, #tpu.memory_space<vmem>>, vector<32x128xf32>
    tpu.vector_store %arg6[%c0_51, %c0_52], %88 {strides = array<i32>} : memref<32x128xf32, #tpu.memory_space<vmem>>, vector<32x128xf32>,
    return
  }
}

</mosaic_0001>

<bundles_post_ra>
// kernel: region_attention_real.2
= control target key start
LH: loop header
LB: loop body
LE: loop exit
PB: predicated region body
PF: predicated region fallthrough
CT: control target
= control target key end

     0   :  { %v2193_v28 = vmov 0.0|0.0   ;;  %vm2194_vm0 = vmmov 0   ;;  %v2195_v29 = vmov 0.0   ;;  %vm154_vm1 = vcmask 261120   ;;  %s2200_s13 = smov 24   ;;  %s2201_s14 = smov 40   ;;  %s3007_s1 = inlined_call_operand.vmem [shape: f32[128,8], index: 1, kind: input, shape index: {}]   ;;  %s3008_s0 = inlined_call_operand.vmem [shape: f32[32,128], index: 0, kind: input, shape index: {}]   ;;  %s3009_s2 = inlined_call_operand.vmem [shape: f32[1,8], index: 2, kind: input, shape index: {}]   ;;  %s3010_s5 = inlined_call_operand.vmem [shape: f32[8,1], index: 5, kind: input, shape index: {}]   ;;  %s3011_s3 = inlined_call_operand.vmem [shape: f32[1,8], index: 3, kind: input, shape index: {}]   ;;  %s3012_s4 = inlined_call_operand.vmem [shape: f32[1,8], index: 4, kind: input, shape index: {}]   ;;  %s3013_s6 = inlined_call_operand.<no memory space> [shape: f32[1,1], index: 6, kind: input, shape index: {}]   ;;  %s3014_s7 = inlined_call_operand.vmem [shape: f32[128,128], index: 7, kind: input, shape index: {}]   ;;  %s3015_s8 = inlined_call_operand.vmem [shape: f32[1,128], index: 8, kind: input, shape index: {}]   ;;  %s3016_s11 = inlined_call_operand.vmem [shape: f32[128,8], index: 11, kind: input, shape index: {}]   ;;  %s3017_s10 = inlined_call_operand.vmem [shape: f32[1,8], index: 10, kind: input, shape index: {}]   ;;  %s3018_s9 = inlined_call_operand.vmem [shape: f32[1,8], index: 9, kind: input, shape index: {}]   ;;  %s3019_s12 = inlined_call_operand.vmem [shape: f32[32,128], index: 12, kind: output, shape index: {}]  }
   0x1   :  { %v46_v0 = vld [vmem:[%s3007_s1] sm:$0xff]  ;;  %v47_v1 = vld [vmem:[%s3007_s1 + $0x8] sm:$0xff]  ;;  %v48_v2 = vld [vmem:[%s3007_s1 + $0x10] sm:$0xff]  ;;  %2014 = vmatprep.subr.bf16.mxu1 %v2193_v28  ;;  %1835 = vmatprep.mubr.msk.f32.mxu1 %vm2194_vm0, %v2195_v29  ;;  %v2196_v41 = vmov 1.0   ;;  %v230_v42 = vlaneseq  ;;  %vm449_vm4 = vcmask 64512   ;;  %vm547_vm7 = vcmask 7168  }
   0x2   :  { %v1976_v3 = vpack.c.bf16 %v47_v1, %v46_v0  ;;  %v49_v4 = vld [vmem:[%s3007_s1 + $0x18] sm:$0xff]  ;;  %v50_v6 = vld [vmem:[%s3007_s1 + $0x20] sm:$0xff]  ;;  %v51_v7 = vld [vmem:[%s3007_s1 + $0x28] sm:$0xff]  ;;  %s2202_s15 = smov 32   ;;  %s2203_s16 = smov 48   ;;  %vm848_vm8 = vcmask 130048  }
   0x3   :  { %v1980_v5 = vpack.c.bf16 %v49_v4, %v48_v2  ;;  %v1984_v8 = vpack.c.bf16 %v51_v7, %v50_v6  ;;  %v42_v9 = vld [vmem:[%s3008_s0] sm:$0xff]  ;;  %v52_v10 = vld [vmem:[%s3007_s1 + $0x30] sm:$0xff]  ;;  %v53_v11 = vld [vmem:[%s3007_s1 + $0x38] sm:$0xff]  ;;  %v231_v43 = vshrl.u32 %v230_v42, 7  ;;  %s2204_s24 = smov 56   ;;  %s2205_s28 = smov 64  }
   0x4   :  { %1977 = vmatprep.subr.bf16.mxu0 %v1976_v3  ;;  %1810 = vmatprep.mubr.f32.mxu0 %v42_v9  ;;  %v1988_v12 = vpack.c.bf16 %v53_v11, %v52_v10  ;;  %v54_v13 = vld [vmem:[%s3007_s1 + $0x40] sm:$0xff]  ;;  %v55_v14 = vld [vmem:[%s3007_s1 + $0x48] sm:$0xff]  ;;  %v56_v16 = vld [vmem:[%s3007_s1 + $0x50] sm:$0xff]  ;;  %s2206_s17 = smov 72   ;;  %s2207_s22 = smov 80   ;;  %vm853_vm9 = vcmask 195584  }
   0x5   :  { %1979 = vmatpush3.bf16.msra.mxu0 %v1976_v3  ;;  %v1992_v15 = vpack.c.bf16 %v55_v14, %v54_v13  ;;  %v57_v17 = vld [vmem:[%s3007_s1 + $0x58] sm:$0xff]  ;;  %v58_v19 = vld [vmem:[%s3007_s1 + $0x60] sm:$0xff]  ;;  %v59_v20 = vld [vmem:[%s3007_s1 + $0x68] sm:$0xff]  ;;  %v2356_v44 = vsub.s32 0, %v231_v43  ;;  %s2208_s26 = smov 88   ;;  %s2209_s27 = smov 96  }
   0x6   :  { %1981 = vmatprep.subr.bf16.mxu0 %v1980_v5  ;;  %v1996_v18 = vpack.c.bf16 %v57_v17, %v56_v16  ;;  %v2000_v21 = vpack.c.bf16 %v59_v20, %v58_v19  ;;  %v60_v22 = vld [vmem:[%s3007_s1 + $0x70] sm:$0xff]  ;;  %v61_v23 = vld [vmem:[%s3007_s1 + $0x78] sm:$0xff]  ;;  %v2332_v25 = vld [vmem:[%s3008_s0 + $0x8] sm:$0xff]  ;;  %s2210_s23 = smov 104   ;;  %s2211_s1 = smov 112   ;;  %vm862_vm10 = vcmask 326656  }
   0x7   :  { %v2004_v24 = vpack.c.bf16 %v61_v23, %v60_v22  ;;  %v44_v26 = vld [vmem:[%s3008_s0 + $0x10] sm:$0xff]  ;;  %v45_v27 = vld [vmem:[%s3008_s0 + $0x18] sm:$0xff]  ;;  %v1668_v30 = vld [vmem:[%s3009_s2] ss:$0 sm:$0xff]  ;;  %vm867_vm11 = vcmask 392192   ;;  %vm872_vm12 = vcmask 457728  }
   0x8   :  { %v446_v59 = vld [vmem:[%s3010_s5] sm:$0xff]  ;;  %s2198_s5 = smov 8   ;;  %vm877_vm13 = vcmask 523264   ;;  %vm882_vm14 = vcmask 588800   ;;  %vm887_vm15 = vcmask 654336  }
   0x9   :  { %1983 = vmatpush3.bf16.msra.mxu0 %v1980_v5  ;;  %v313_v0 = vld [vmem:[%s3011_s3] sm:$0x1] }
   0xa   :  { %1985 = vmatprep.subr.bf16.mxu0 %v1984_v8  ;;  %v1671_v4 = vld [vmem:[%s3012_s4] ss:$0 sm:$0xff] }
   0xd   :  { %1987 = vmatpush3.bf16.msra.mxu0 %v1984_v8 }
   0xe   :  { %1989 = vmatprep.subr.bf16.mxu0 %v1988_v12 }
  0x11   :  { %1991 = vmatpush3.bf16.msra.mxu0 %v1988_v12 }
  0x12   :  { %1993 = vmatprep.subr.bf16.mxu0 %v1992_v15 }
  0x15   :  { %1995 = vmatpush3.bf16.msra.mxu0 %v1992_v15 }
  0x16   :  { %1997 = vmatprep.subr.bf16.mxu0 %v1996_v18 }
  0x19   :  { %1999 = vmatpush3.bf16.msra.mxu0 %v1996_v18 }
  0x1a   :  { %2001 = vmatprep.subr.bf16.mxu0 %v2000_v21 }
  0x1d   :  { %2003 = vmatpush3.bf16.msra.mxu0 %v2000_v21 }
  0x1e   :  { %2005 = vmatprep.subr.bf16.mxu0 %v2004_v24 }
  0x21   :  { %2007 = vmatpush3.bf16.msra.mxu0 %v2004_v24 }
  0x22   :  { %2008 = vmatprep.subr.bf16.mxu0 %v2193_v28 }
  0x24   :  { %1811 = vmatmul.mubr.f32.vlgmr.msra.gmra.mrb[0].mxu0 %v2332_v25 }
  0x25   :  { %1813 = vmatprep.mubr.f32.mxu0 %v44_v26 }
  0x28   :  { %1814 = vmatmul.mubr.f32.gmra.mrb[2].mxu0 %v45_v27 }
  0x29   :  { %1824 = vmatprep.mubr.msk.f32.mxu0 %vm2194_vm0, %v2195_v29 }
  0xf7   :  { %v1812_v31 = vpop.f32.mrb[0].mxu0 }
  0xf8   :  { %v141_v32 = vadd.f32 %v1812_v31, %v1668_v30  ;;  %v135_v33 = vpop.f32.mrb[1].mxu0 }
  0xf9   :  { %v136_v34 = vadd.f32 %v1668_v30, %v135_v33 }
  0xfb   :  { %v2009_v35 = vpack.c.bf16 %v141_v32, %v136_v34  ;;  %v1815_v36 = vpop.f32.mrb[2].mxu0 }
  0xfc   :  { %v151_v37 = vadd.f32 %v1815_v36, %v1668_v30  ;;  %v145_v38 = vpop.f32.mrb[3].mxu0 }
  0xfd   :  { %v146_v39 = vadd.f32 %v1668_v30, %v145_v38  ;;  %2010 = vmatpush3.bf16.msra.mxu0 %v2009_v35 }
  0xfe   :  { %2011 = vmatprep.subr.bf16.mxu0 %v2193_v28 }
  0xff   :  { %v2012_v40 = vpack.c.bf16 %v151_v37, %v146_v39 }
 0x101   :  { %2013 = vmatpush3.bf16.msra.mxu0 %v2012_v40 }
 0x102   :  { %2052 = vmatprep.subr.bf16.mxu0 %v2193_v28 }
 0x104   :  { %1825 = vmatmul.mubr.msk.f32.vlgmr.msra.gmra.mrb[4].mxu0 %vm154_vm1, %v2196_v41 }
 0x105   :  { %1892 = vmatprep.mubr.msk.f32.mxu0 %vm2194_vm0, %v2195_v29 }
 0x1d7   :  { %v224_v45 = vpop.f32.mrb[4].mxu0 }
 0x1d8   :  { %v229_v46 = vmul.f32 0.03125, %v224_v45  ;;  %v1826_v47 = vpop.f32.mrb[5].mxu0 }
 0x1da   :  { %v233_v48 = vrot.slane %v229_v46, %v2356_v44 }
 0x1dc   :  { %v234_v49 = vsub.f32 %v136_v34, %v233_v48  ;;  %v235_v50 = vsub.f32 %v141_v32, %v233_v48  ;;  %v236_v51 = vsub.f32 %v146_v39, %v233_v48  ;;  %v237_v52 = vsub.f32 %v151_v37, %v233_v48 }
 0x1de   :  { %v238_v53 = vmul.f32 %v234_v49, %v234_v49  ;;  %v239_v54 = vmul.f32 %v235_v50, %v235_v50  ;;  %v240_v56 = vmul.f32 %v236_v51, %v236_v51  ;;  %v241_v57 = vmul.f32 %v237_v52, %v237_v52 }
 0x1e0   :  { %v2015_v55 = vpack.c.bf16 %v239_v54, %v238_v53  ;;  %v2018_v58 = vpack.c.bf16 %v241_v57, %v240_v56 }
 0x1e2   :  { %2016 = vmatpush3.bf16.msra.mxu1 %v2015_v55 }
 0x1e3   :  { %2017 = vmatprep.subr.bf16.mxu1 %v2193_v28 }
 0x1e6   :  { %2019 = vmatpush3.bf16.msra.mxu1 %v2018_v58 }
 0x1e7   :  { %1838 = vmatprep.subr.mxu1 %v446_v59 }
 0x1e9   :  { %1836 = vmatmul.mubr.msk.f32.vlgmr.msra.gmra.mrb[0].mxu1 %vm154_vm1, %v2196_v41 }
 0x1ea   :  { %1839 = vmatpush3.msra.mxu1 %v446_v59 }
 0x2bc   :  { %v308_v60 = vpop.f32.mrb[0].mxu1 }
 0x2bd   :  { %v312_v61 = vmul.f32 0.03125, %v308_v60  ;;  %v1837_v62 = vpop.f32.mrb[1].mxu1 }
 0x2bf   :  { %v314_v63 = vadd.f32 1e-05, %v312_v61 }
 0x2c1   :  { %2134 = vrsqrt.f32 %v314_v63 }
 0x2cb   :  { %v2135_v1 = vpop.eup %2134 }
 0x2cc   :  { %v316_v2 = vmul.f32 %v2135_v1, %v313_v0 }
 0x2ce   :  { %v321_v3 = vrot.slane %v316_v2, %v2356_v44 }
 0x2d0   :  { %v323_v5 = vmul.f32 %v321_v3, %v234_v49  ;;  %v324_v6 = vmul.f32 %v321_v3, %v235_v50  ;;  %v325_v7 = vmul.f32 %v321_v3, %v236_v51  ;;  %v326_v8 = vmul.f32 %v321_v3, %v237_v52 }
 0x2d2   :  { %v2372_v9 = vadd.f32 %v1671_v4, %v323_v5  ;;  %v2374_v10 = vadd.f32 %v1671_v4, %v324_v6  ;;  %v2376_v11 = vadd.f32 %v1671_v4, %v325_v7  ;;  %v2378_v12 = vadd.f32 %v1671_v4, %v326_v8 }
 0x2d4   :  { %v2381_v13 = vmul.f32 0.70710677, %v2372_v9  ;;  %v2384_v14 = vmul.f32 0.70710677, %v2374_v10  ;;  %v2387_v15 = vmul.f32 0.70710677, %v2376_v11 }
 0x2d5   :  { %v2390_v16 = vmul.f32 0.70710677, %v2378_v12 }
 0x2d6   :  { %v346_v17 = vand.u32 2147483647, %v2381_v13  ;;  %v347_v18 = vand.u32 2147483647, %v2384_v14  ;;  %v348_v19 = vand.u32 2147483647, %v2387_v15 }
 0x2d7   :  { %v349_v20 = vand.u32 2147483647, %v2390_v16  ;;  %vm426_vm2 = vcmp.ge.f32.partialorder %v2381_v13, 0.0  ;;  %vm427_vm3 = vcmp.ge.f32.partialorder %v2384_v14, 0.0  ;;  %vm428_vm5 = vcmp.ge.f32.partialorder %v2387_v15, 0.0 }
 0x2d8   :  { %v350_v21 = vmul.f32 0.3275911, %v346_v17  ;;  %v351_v22 = vmul.f32 0.3275911, %v347_v18  ;;  %v352_v23 = vmul.f32 0.3275911, %v348_v19 }
 0x2d9   :  { %v353_v27 = vmul.f32 0.3275911, %v349_v20  ;;  %v402_v32 = vsub.f32 0.0, %v346_v17  ;;  %v403_v33 = vsub.f32 0.0, %v347_v18  ;;  %v404_v36 = vsub.f32 0.0, %v348_v19 }
 0x2da   :  { %v354_v24 = vadd.f32 1.0, %v350_v21  ;;  %v355_v26 = vadd.f32 1.0, %v351_v22  ;;  %v356_v30 = vadd.f32 1.0, %v352_v23  ;;  %v405_v42 = vsub.f32 0.0, %v349_v20 }
 0x2db   :  { %v357_v31 = vadd.f32 1.0, %v353_v27  ;;  %v406_v35 = vmul.f32 %v402_v32, %v346_v17  ;;  %v407_v39 = vmul.f32 %v403_v33, %v347_v18  ;;  %v408_v48 = vmul.f32 %v404_v36, %v348_v19 }
 0x2dc   :  { %2136 = vrcp.f32 %v354_v24  ;;  %v409_v54 = vmul.f32 %v405_v42, %v349_v20  ;;  %vm429_vm6 = vcmp.ge.f32.partialorder %v2390_v16, 0.0  ;;  %v341_v15 = vmul.f32 0.5, %v2378_v12 }
 0x2dd   :  { %2138 = vrcp.f32 %v355_v26  ;;  %v410_v46 = vmul.f32 1.442695, %v406_v35  ;;  %v412_v50 = vmul.f32 1.442695, %v407_v39  ;;  %v414_v59 = vmul.f32 1.442695, %v408_v48 }
 0x2de   :  { %2140 = vrcp.f32 %v356_v30  ;;  %v416_v0 = vmul.f32 1.442695, %v409_v54  ;;  %v448_v16 = vstv %s3013_s6  ;;  %s2199_s6 = smov 16  }
 0x2df   :  { %2142 = vrcp.f32 %v357_v31 }
 0x2e0   :  { %2144 = vpow2.f32 %v410_v46 }
 0x2e1   :  { %2146 = vpow2.f32 %v412_v50  ;;  %v338_v50 = vmul.f32 0.5, %v2372_v9  ;;  %v340_v9 = vmul.f32 0.5, %v2376_v11  ;;  %v2197_v11 = vmov 0  }
 0x2e2   :  { %2148 = vpow2.f32 %v414_v59  ;;  %2132 = vset.pattern.permute.xlu0 %v2197_v11  ;;  %2133 = vset.pattern.permute.xlu1 %v2197_v11 }
 0x2e3   :  { %2150 = vpow2.f32 %v416_v0 }
 0x2e6   :  { %v2137_v34 = vpop.eup %2136 }
 0x2e7   :  { %v2139_v37 = vpop.eup %2138  ;;  %v366_v38 = vmul.f32 1.0614054, %v2137_v34 }
 0x2e8   :  { %v367_v40 = vmul.f32 1.0614054, %v2139_v37  ;;  %v2141_v45 = vpop.eup %2140 }
 0x2e9   :  { %v370_v43 = vadd.f32 -1.4531521, %v366_v38  ;;  %v368_v51 = vmul.f32 1.0614054, %v2141_v45  ;;  %v2143_v52 = vpop.eup %2142 }
 0x2ea   :  { %v371_v47 = vadd.f32 -1.4531521, %v367_v40  ;;  %v369_v57 = vmul.f32 1.0614054, %v2143_v52  ;;  %v2145_v24 = vpop.eup %2144 }
 0x2eb   :  { %v374_v49 = vmul.f32 %v2137_v34, %v370_v43  ;;  %v372_v56 = vadd.f32 -1.4531521, %v368_v51  ;;  %v2147_v27 = vpop.eup %2146 }
 0x2ec   :  { %v375_v53 = vmul.f32 %v2139_v37, %v371_v47  ;;  %v373_v62 = vadd.f32 -1.4531521, %v369_v57  ;;  %v2149_v39 = vpop.eup %2148 }
 0x2ed   :  { %v378_v55 = vadd.f32 1.4214138, %v374_v49  ;;  %v376_v61 = vmul.f32 %v2141_v45, %v372_v56  ;;  %v2151_v47 = vpop.eup %2150 }
 0x2ee   :  { %v379_v58 = vadd.f32 1.4214138, %v375_v53  ;;  %v377_v3 = vmul.f32 %v2143_v52, %v373_v62  ;;  %v339_v53 = vmul.f32 0.5, %v2374_v10 }
 0x2ef   :  { %v382_v60 = vmul.f32 %v2137_v34, %v378_v55  ;;  %v380_v2 = vadd.f32 1.4214138, %v376_v61 }
 0x2f0   :  { %v383_v63 = vmul.f32 %v2139_v37, %v379_v58  ;;  %v381_v7 = vadd.f32 1.4214138, %v377_v3 }
 0x2f1   :  { %v386_v1 = vadd.f32 -0.28449672, %v382_v60  ;;  %v384_v6 = vmul.f32 %v2141_v45, %v380_v2 }
 0x2f2   :  { %v387_v4 = vadd.f32 -0.28449672, %v383_v63  ;;  %v385_v19 = vmul.f32 %v2143_v52, %v381_v7 }
 0x2f3   :  { %v390_v5 = vmul.f32 %v2137_v34, %v386_v1  ;;  %v388_v18 = vadd.f32 -0.28449672, %v384_v6 }
 0x2f4   :  { %v391_v8 = vmul.f32 %v2139_v37, %v387_v4  ;;  %v389_v23 = vadd.f32 -0.28449672, %v385_v19 }
 0x2f5   :  { %v394_v17 = vadd.f32 0.2548296, %v390_v5  ;;  %v392_v22 = vmul.f32 %v2141_v45, %v388_v18 }
 0x2f6   :  { %v395_v20 = vadd.f32 0.2548296, %v391_v8  ;;  %v393_v32 = vmul.f32 %v2143_v52, %v389_v23 }
 0x2f7   :  { %v398_v21 = vmul.f32 %v2137_v34, %v394_v17  ;;  %v396_v31 = vadd.f32 0.2548296, %v392_v22 }
 0x2f8   :  { %v399_v26 = vmul.f32 %v2139_v37, %v395_v20  ;;  %v397_v38 = vadd.f32 0.2548296, %v393_v32 }
 0x2f9   :  { %v418_v30 = vmul.f32 %v2145_v24, %v398_v21  ;;  %v400_v36 = vmul.f32 %v2141_v45, %v396_v31 }
 0x2fa   :  { %v419_v33 = vmul.f32 %v2147_v27, %v399_v26  ;;  %v401_v46 = vmul.f32 %v2143_v52, %v397_v38 }
 0x2fb   :  { %v422_v35 = vsub.f32 1.0, %v418_v30  ;;  %v420_v43 = vmul.f32 %v2149_v39, %v400_v36 }
 0x2fc   :  { %v423_v40 = vsub.f32 1.0, %v419_v33  ;;  %v421_v49 = vmul.f32 %v2151_v47, %v401_v46 }
 0x2fd   :  { %v430_v42 = vsub.f32 0.0, %v422_v35  ;;  %v424_v37 = vsub.f32 1.0, %v420_v43 }
 0x2fe   :  { %v431_v34 = vsub.f32 0.0, %v423_v40  ;;  %v425_v56 = vsub.f32 1.0, %v421_v49 }
 0x2ff   :  { %v434_v48 = vsel %vm426_vm2, %v422_v35, %v430_v42  ;;  %v432_v55 = vsub.f32 0.0, %v424_v37  ;;  %vm892_vm2 = vcmask 719872  }
 0x300   :  { %v438_v51 = vadd.f32 1.0, %v434_v48  ;;  %v435_v45 = vsel %vm427_vm3, %v423_v40, %v431_v34  ;;  %v433_v14 = vsub.f32 0.0, %v425_v56  ;;  %vm897_vm3 = vcmask 785408  }
 0x301   :  { %v439_v54 = vadd.f32 1.0, %v435_v45  ;;  %v436_v57 = vsel %vm428_vm5, %v424_v37, %v432_v55  ;;  %vm902_vm5 = vcmask 850944  }
 0x302   :  { %v2400_v52 = vmul.f32 %v438_v51, %v338_v50  ;;  %v440_v58 = vadd.f32 1.0, %v436_v57  ;;  %v437_v10 = vsel %vm429_vm6, %v425_v56, %v433_v14  ;;  %vm907_vm6 = vcmask 916480  }
 0x303   :  { %v2403_v13 = vmul.f32 %v439_v54, %v339_v53  ;;  %v441_v60 = vadd.f32 1.0, %v437_v10 }
 0x304   :  { %1840 = vmatprep.mubr.msk.f32.mxu1 %vm449_vm4, %v2400_v52  ;;  %v2411_v59 = vmul.f32 %v440_v58, %v340_v9 }
 0x305   :  { %1841 = vmatmul.mubr.msk.f32.vlgmr.msra.gmra.mrb[2].mxu1 %vm449_vm4, %v2403_v13  ;;  %v2416_v61 = vmul.f32 %v441_v60, %v341_v15 }
 0x306   :  { %1843 = vmatprep.mubr.msk.f32.mxu1 %vm449_vm4, %v2411_v59 }
 0x309   :  { %1844 = vmatmul.mubr.msk.f32.gmra.mrb[4].mxu1 %vm449_vm4, %v2416_v61 }
 0x3d8   :  { %v1842_v62 = vpop.f32.mrb[2].mxu1 }
 0x3d9   :  { %v534_v63 = vadd.f32 %v1842_v62, %v448_v16  ;;  %v528_v12 = vpop.f32.mrb[3].mxu1 }
 0x3da   :  { %v529_v0 = vadd.f32 %v528_v12, %v448_v16 }
 0x3db   :  { %v549_v1 = vsel %vm547_vm7, %v534_v63, -inf }
 0x3dc   :  { %v548_v2 = vsel %vm547_vm7, %v529_v0, -inf  ;;  %v1845_v4 = vpop.f32.mrb[4].mxu1 }
 0x3dd   :  { %v550_v3 = vmax.f32 %v548_v2, %v549_v1  ;;  %v544_v5 = vadd.f32 %v1845_v4, %v448_v16  ;;  %v538_v6 = vpop.f32.mrb[5].mxu1 }
 0x3de   :  { %v539_v8 = vadd.f32 %v538_v6, %v448_v16 }
 0x3df   :  { %v551_v7 = vrot.slane %v550_v3, 4  ;;  %v558_v17 = vsel %vm547_vm7, %v544_v5, -inf }
 0x3e0   :  { %v557_v19 = vsel %vm547_vm7, %v539_v8, -inf }
 0x3e1   :  { %v552_v18 = vmax.f32 %v550_v3, %v551_v7  ;;  %v559_v20 = vmax.f32 %v557_v19, %v558_v17 }
 0x3e3   :  { %v553_v21 = vrot.slane %v552_v18, 2  ;;  %v560_v22 = vrot.slane %v559_v20, 4 }
 0x3e5   :  { %v554_v23 = vmax.f32 %v552_v18, %v553_v21  ;;  %v561_v24 = vmax.f32 %v559_v20, %v560_v22 }
 0x3e7   :  { %v555_v26 = vrot.slane %v554_v23, 1  ;;  %v562_v27 = vrot.slane %v561_v24, 2 }
 0x3e9   :  { %v556_v30 = vmax.f32 %v554_v23, %v555_v26  ;;  %v563_v31 = vmax.f32 %v561_v24, %v562_v27 }
 0x3eb   :  { %v566_v32 = vsub.f32 %v529_v0, %v556_v30  ;;  %v567_v33 = vsub.f32 %v534_v63, %v556_v30  ;;  %v564_v35 = vrot.slane %v563_v31, 1 }
 0x3ed   :  { %v570_v36 = vmul.f32 1.442695, %v566_v32  ;;  %v572_v38 = vmul.f32 1.442695, %v567_v33  ;;  %v565_v39 = vmax.f32 %v563_v31, %v564_v35 }
 0x3ef   :  { %2152 = vpow2.f32 %v570_v36  ;;  %v568_v40 = vsub.f32 %v539_v8, %v565_v39  ;;  %v569_v42 = vsub.f32 %v544_v5, %v565_v39 }
 0x3f0   :  { %2154 = vpow2.f32 %v572_v38 }
 0x3f1   :  { %v574_v43 = vmul.f32 1.442695, %v568_v40  ;;  %v576_v46 = vmul.f32 1.442695, %v569_v42 }
 0x3f3   :  { %2156 = vpow2.f32 %v574_v43 }
 0x3f4   :  { %2158 = vpow2.f32 %v576_v46 }
 0x3f9   :  { %v2153_v47 = vpop.eup %2152 }
 0x3fa   :  { %v2155_v34 = vpop.eup %2154  ;;  %v578_v48 = vsel %vm547_vm7, %v2153_v47, 0.0 }
 0x3fb   :  { %v579_v37 = vsel %vm547_vm7, %v2155_v34, 0.0 }
 0x3fc   :  { %v580_v49 = vadd.f32 %v579_v37, %v578_v48 }
 0x3fd   :  { %v2157_v50 = vpop.eup %2156 }
 0x3fe   :  { %v581_v51 = vrot.slane %v580_v49, 4  ;;  %v2159_v45 = vpop.eup %2158  ;;  %v587_v53 = vsel %vm547_vm7, %v2157_v50, 0.0 }
 0x3ff   :  { %v588_v54 = vsel %vm547_vm7, %v2159_v45, 0.0  ;;  %vm912_vm7 = vcmask 982016  }
 0x400   :  { %v582_v55 = vadd.f32 %v581_v51, %v580_v49  ;;  %v589_v56 = vadd.f32 %v588_v54, %v587_v53  ;;  %v922_v51 = vld [vmem:[%s3014_s7 + $0x8] sm:$0xff]  ;;  %v923_v53 = vld [vmem:[%s3014_s7 + $0x10] sm:$0xff]  ;;  %v924_v54 = vld [vmem:[%s3014_s7 + $0x18] sm:$0xff] }
 0x402   :  { %v583_v57 = vrot.slane %v582_v55, 2  ;;  %v590_v14 = vrot.slane %v589_v56, 4 }
 0x404   :  { %v584_v9 = vadd.f32 %v583_v57, %v582_v55  ;;  %v591_v58 = vadd.f32 %v590_v14, %v589_v56  ;;  %v2024_v56 = vpack.c.bf16 %v924_v54, %v923_v53  ;;  %v925_v57 = vld [vmem:[%s3014_s7 + $0x20] sm:$0xff]  ;;  %v926_v14 = vld [vmem:[%s3014_s7 + $0x28] sm:$0xff] }
 0x406   :  { %v585_v10 = vrot.slane %v584_v9, 1  ;;  %v592_v15 = vrot.slane %v591_v58, 2 }
 0x408   :  { %v586_v60 = vadd.f32 %v585_v10, %v584_v9  ;;  %v593_v11 = vadd.f32 %v592_v15, %v591_v58  ;;  %v2028_v9 = vpack.c.bf16 %v926_v14, %v925_v57  ;;  %v927_v58 = vld [vmem:[%s3014_s7 + $0x30] sm:$0xff]  ;;  %v928_v10 = vld [vmem:[%s3014_s7 + $0x38] sm:$0xff] }
 0x409   :  { %v2032_v15 = vpack.c.bf16 %v928_v10, %v927_v58 }
 0x40a   :  { %2160 = vrcp.f32 %v586_v60  ;;  %v594_v16 = vrot.slane %v593_v11, 1  ;;  %v929_v60 = vld [vmem:[%s3014_s7 + $0x40] sm:$0xff] }
 0x40c   :  { %v595_v62 = vadd.f32 %v594_v16, %v593_v11  ;;  %v930_v11 = vld [vmem:[%s3014_s7 + $0x48] sm:$0xff] }
 0x40d   :  { %v2036_v16 = vpack.c.bf16 %v930_v11, %v929_v60 }
 0x40e   :  { %2162 = vrcp.f32 %v595_v62 }
 0x414   :  { %v2161_v63 = vpop.eup %2160 }
 0x415   :  { %v597_v12 = vmul.f32 %v2161_v63, %v2153_v47  ;;  %v598_v0 = vmul.f32 %v2161_v63, %v2155_v34  ;;  %v931_v63 = vld [vmem:[%s3014_s7 + $0x50] sm:$0xff] }
 0x417   :  { %604 = vperm.xlu0 %2132, %v597_v12   ;;  %v932_v12 = vld [vmem:[%s3014_s7 + $0x58] sm:$0xff] }
 0x418   :  { %v2163_v1 = vpop.eup %2162 }
 0x419   :  { %v600_v2 = vmul.f32 %v2163_v1, %v2157_v50  ;;  %v601_v3 = vmul.f32 %v2163_v1, %v2159_v45  ;;  %v921_v50 = vld [vmem:[%s3014_s7] sm:$0xff] }
 0x41a   :  { %v2020_v45 = vpack.c.bf16 %v922_v51, %v921_v50 }
 0x41b   :  { %609 = vperm.xlu0 %2132, %v598_v0   ;;  %614 = vperm.xlu1 %2133, %v600_v2   ;;  %v2040_v0 = vpack.c.bf16 %v932_v12, %v931_v63  ;;  %v933_v2 = vld [vmem:[%s3014_s7 + $0x60] sm:$0xff] }
 0x41c   :  { %2021 = vmatprep.subr.bf16.mxu1 %v2020_v45 }
 0x41d   :  { %2023 = vmatpush3.bf16.msra.mxu1 %v2020_v45 }
 0x41e   :  { %2025 = vmatprep.subr.bf16.mxu1 %v2024_v56 }
 0x41f   :  { %619 = vperm.xlu1 %2133, %v601_v3   ;;  %v934_v3 = vld [vmem:[%s3014_s7 + $0x68] sm:$0xff] }
 0x421   :  { %2027 = vmatpush3.bf16.msra.mxu1 %v2024_v56 }
 0x422   :  { %2029 = vmatprep.subr.bf16.mxu1 %v2028_v9 }
 0x425   :  { %2031 = vmatpush3.bf16.msra.mxu1 %v2028_v9 }
 0x426   :  { %2033 = vmatprep.subr.bf16.mxu1 %v2032_v15 }
 0x429   :  { %2035 = vmatpush3.bf16.msra.mxu1 %v2032_v15 }
 0x42a   :  { %2037 = vmatprep.subr.bf16.mxu1 %v2036_v16 }
 0x42d   :  { %2039 = vmatpush3.bf16.msra.mxu1 %v2036_v16 }
 0x42e   :  { %2041 = vmatprep.subr.bf16.mxu1 %v2040_v0 }
 0x431   :  { %2043 = vmatpush3.bf16.msra.mxu1 %v2040_v0 }
 0x496   :  { %v605_v4 = vpop.permute.xlu0 %604 }
 0x497   :  { %v622_v5 = vmul.f32 %v605_v4, %v2400_v52  ;;  %v2044_v4 = vpack.c.bf16 %v934_v3, %v933_v2  ;;  %v2190_v3 = vld [vmem:[%s3008_s0] sm:$0xff] }
 0x499   :  { %v626_v8 = vsel %vm449_vm4, %v622_v5, 0.0  ;;  %2045 = vmatprep.subr.bf16.mxu1 %v2044_v4  ;;  %v935_v5 = vld [vmem:[%s3014_s7 + $0x70] sm:$0xff] }
 0x49a   :  { %v610_v6 = vpop.permute.xlu0 %609  ;;  %v615_v27 = vpop.permute.xlu1 %614  ;;  %2047 = vmatpush3.bf16.msra.mxu1 %v2044_v4 }
 0x49b   :  { %v623_v7 = vmul.f32 %v610_v6, %v2403_v13  ;;  %v624_v33 = vmul.f32 %v615_v27, %v2411_v59  ;;  %v936_v6 = vld [vmem:[%s3014_s7 + $0x78] sm:$0xff]  ;;  %s2212_s7 = smov 120  }
 0x49d   :  { %v627_v17 = vsel %vm449_vm4, %v623_v7, 0.0  ;;  %v635_v39 = vsel %vm449_vm4, %v624_v33, 0.0  ;;  %v2048_v7 = vpack.c.bf16 %v936_v6, %v935_v5 }
 0x49e   :  { %v628_v18 = vadd.f32 %v627_v17, %v626_v8  ;;  %v620_v31 = vpop.permute.xlu1 %619 }
 0x49f   :  { %v625_v32 = vmul.f32 %v620_v31, %v2416_v61  ;;  %2049 = vmatprep.subr.bf16.mxu1 %v2048_v7 }
 0x4a0   :  { %v629_v19 = vrot.slane %v628_v18, 4  ;;  %2051 = vmatpush3.bf16.msra.mxu1 %v2048_v7 }
 0x4a1   :  { %v636_v38 = vsel %vm449_vm4, %v625_v32, 0.0  ;;  %2082 = vmatprep.subr.bf16.mxu1 %v2193_v28 }
 0x4a2   :  { %v630_v20 = vadd.f32 %v629_v19, %v628_v18  ;;  %v637_v40 = vadd.f32 %v636_v38, %v635_v39 }
 0x4a4   :  { %v631_v21 = vrot.slane %v630_v20, 2  ;;  %v638_v42 = vrot.slane %v637_v40, 4 }
 0x4a6   :  { %v632_v22 = vadd.f32 %v631_v21, %v630_v20  ;;  %v639_v43 = vadd.f32 %v638_v42, %v637_v40 }
 0x4a8   :  { %v633_v23 = vrot.slane %v632_v22, 1  ;;  %v640_v48 = vrot.slane %v639_v43, 2 }
 0x4aa   :  { %v634_v24 = vadd.f32 %v633_v23, %v632_v22  ;;  %v641_v37 = vadd.f32 %v640_v48, %v639_v43 }
 0x4ac   :  { %v644_v26 = vsub.f32 0.0, %v634_v24 }
 0x4ae   :  { %v646_v30 = vmul.f32 1.442695, %v644_v26 }
 0x4b0   :  { %2164 = vpow2.f32 %v646_v30 }
 0x4ba   :  { %v2165_v35 = vpop.eup %2164 }
 0x4bb   :  { %v650_v36 = vadd.f32 1.0, %v2165_v35 }
 0x4bd   :  { %2166 = vrcp.f32 %v650_v36 }
 0x4c7   :  { %v2167_v46 = vpop.eup %2166 }
 0x4c8   :  { %v2440_v47 = vmul.f32 %v2167_v46, %v2400_v52  ;;  %v2443_v34 = vmul.f32 %v2167_v46, %v2403_v13  ;;  %v642_v52 = vrot.slane %v641_v37, 1 }
 0x4ca   :  { %666 = vrot.lane.b32.xlu1 %v2443_v34, %s2198_s5  ;;  %664 = vrot.lane.b32.xlu0 %v2440_v47, %s2198_s5  ;;  %v643_v13 = vadd.f32 %v642_v52, %v641_v37 }
 0x4cc   :  { %v645_v49 = vsub.f32 0.0, %v643_v13 }
 0x4ce   :  { %678 = vrot.lane.b32.xlu1 %v2443_v34, %s2199_s6  ;;  %676 = vrot.lane.b32.xlu0 %v2440_v47, %s2199_s6  ;;  %v648_v55 = vmul.f32 1.442695, %v645_v49 }
 0x4d0   :  { %2168 = vpow2.f32 %v648_v55 }
 0x4d2   :  { %690 = vrot.lane.b32.xlu1 %v2443_v34, %s2200_s13  ;;  %688 = vrot.lane.b32.xlu0 %v2440_v47, %s2200_s13 }
 0x4d6   :  { %712 = vrot.lane.b32.xlu1 %v2440_v47, %s2201_s14  ;;  %700 = vrot.lane.b32.xlu0 %v2440_v47, %s2202_s15 }
 0x4da   :  { %724 = vrot.lane.b32.xlu1 %v2440_v47, %s2203_s16  ;;  %702 = vrot.lane.b32.xlu0 %v2443_v34, %s2202_s15  ;;  %v2169_v62 = vpop.eup %2168 }
 0x4db   :  { %v651_v1 = vadd.f32 1.0, %v2169_v62 }
 0x4dd   :  { %2170 = vrcp.f32 %v651_v1 }
 0x4de   :  { %736 = vrot.lane.b32.xlu1 %v2440_v47, %s2204_s24  ;;  %714 = vrot.lane.b32.xlu0 %v2443_v34, %s2201_s14 }
 0x4e2   :  { %748 = vrot.lane.b32.xlu1 %v2440_v47, %s2205_s28  ;;  %726 = vrot.lane.b32.xlu0 %v2443_v34, %s2203_s16 }
 0x4e6   :  { %760 = vrot.lane.b32.xlu1 %v2440_v47, %s2206_s17  ;;  %738 = vrot.lane.b32.xlu0 %v2443_v34, %s2204_s24 }
 0x4e7   :  { %v2171_v8 = vpop.eup %2170 }
 0x4e8   :  { %v2551_v17 = vmul.f32 %v2171_v8, %v2411_v59  ;;  %v2562_v18 = vmul.f32 %v2171_v8, %v2416_v61 }
 0x4ea   :  { %772 = vrot.lane.b32.xlu1 %v2440_v47, %s2207_s22  ;;  %750 = vrot.lane.b32.xlu0 %v2443_v34, %s2205_s28 }
 0x4ee   :  { %784 = vrot.lane.b32.xlu1 %v2440_v47, %s2208_s26  ;;  %762 = vrot.lane.b32.xlu0 %v2443_v34, %s2206_s17 }
 0x4f2   :  { %796 = vrot.lane.b32.xlu1 %v2440_v47, %s2209_s27  ;;  %774 = vrot.lane.b32.xlu0 %v2443_v34, %s2207_s22 }
 0x4f6   :  { %808 = vrot.lane.b32.xlu1 %v2440_v47, %s2210_s23  ;;  %786 = vrot.lane.b32.xlu0 %v2443_v34, %s2208_s26 }
 0x4fa   :  { %820 = vrot.lane.b32.xlu1 %v2440_v47, %s2211_s1  ;;  %798 = vrot.lane.b32.xlu0 %v2443_v34, %s2209_s27 }
 0x4fe   :  { %832 = vrot.lane.b32.xlu1 %v2440_v47, %s2212_s7  ;;  %810 = vrot.lane.b32.xlu0 %v2443_v34, %s2210_s23 }
 0x502   :  { %668 = vrot.lane.b32.xlu1 %v2551_v17, %s2198_s5  ;;  %822 = vrot.lane.b32.xlu0 %v2443_v34, %s2211_s1 }
 0x506   :  { %680 = vrot.lane.b32.xlu1 %v2551_v17, %s2199_s6  ;;  %834 = vrot.lane.b32.xlu0 %v2443_v34, %s2212_s7 }
 0x50a   :  { %692 = vrot.lane.b32.xlu1 %v2551_v17, %s2200_s13  ;;  %670 = vrot.lane.b32.xlu0 %v2562_v18, %s2198_s5 }
 0x50e   :  { %704 = vrot.lane.b32.xlu1 %v2551_v17, %s2202_s15  ;;  %682 = vrot.lane.b32.xlu0 %v2562_v18, %s2199_s6 }
 0x512   :  { %716 = vrot.lane.b32.xlu1 %v2551_v17, %s2201_s14  ;;  %694 = vrot.lane.b32.xlu0 %v2562_v18, %s2200_s13 }
 0x516   :  { %728 = vrot.lane.b32.xlu1 %v2551_v17, %s2203_s16  ;;  %706 = vrot.lane.b32.xlu0 %v2562_v18, %s2202_s15 }
 0x51a   :  { %740 = vrot.lane.b32.xlu1 %v2551_v17, %s2204_s24  ;;  %718 = vrot.lane.b32.xlu0 %v2562_v18, %s2201_s14 }
 0x51e   :  { %752 = vrot.lane.b32.xlu1 %v2551_v17, %s2205_s28  ;;  %730 = vrot.lane.b32.xlu0 %v2562_v18, %s2203_s16 }
 0x522   :  { %764 = vrot.lane.b32.xlu1 %v2551_v17, %s2206_s17  ;;  %742 = vrot.lane.b32.xlu0 %v2562_v18, %s2204_s24 }
 0x526   :  { %776 = vrot.lane.b32.xlu1 %v2551_v17, %s2207_s22  ;;  %754 = vrot.lane.b32.xlu0 %v2562_v18, %s2205_s28 }
 0x52a   :  { %788 = vrot.lane.b32.xlu1 %v2551_v17, %s2208_s26  ;;  %766 = vrot.lane.b32.xlu0 %v2562_v18, %s2206_s17 }
 0x52e   :  { %800 = vrot.lane.b32.xlu1 %v2551_v17, %s2209_s27  ;;  %778 = vrot.lane.b32.xlu0 %v2562_v18, %s2207_s22 }
 0x532   :  { %802 = vrot.lane.b32.xlu1 %v2562_v18, %s2209_s27  ;;  %790 = vrot.lane.b32.xlu0 %v2562_v18, %s2208_s26 }
 0x536   :  { %814 = vrot.lane.b32.xlu1 %v2562_v18, %s2210_s23  ;;  %812 = vrot.lane.b32.xlu0 %v2551_v17, %s2210_s23 }
 0x53a   :  { %826 = vrot.lane.b32.xlu1 %v2562_v18, %s2211_s1  ;;  %824 = vrot.lane.b32.xlu0 %v2551_v17, %s2211_s1 }
 0x53c   :  { %v667_v59 = vpop.permute.xlu1 %666  ;;  %v665_v61 = vpop.permute.xlu0 %664 }
 0x53d   :  { %v844_v43 = vsel %vm449_vm4, %v2440_v47, %v665_v61  ;;  %v845_v54 = vsel %vm449_vm4, %v2443_v34, %v667_v59 }
 0x53e   :  { %838 = vrot.lane.b32.xlu1 %v2562_v18, %s2212_s7  ;;  %836 = vrot.lane.b32.xlu0 %v2551_v17, %s2212_s7 }
 0x540   :  { %v679_v19 = vpop.permute.xlu1 %678  ;;  %v677_v20 = vpop.permute.xlu0 %676 }
 0x541   :  { %v849_v46 = vsel %vm848_vm8, %v844_v43, %v677_v20  ;;  %v850_v56 = vsel %vm848_vm8, %v845_v54, %v679_v19 }
 0x544   :  { %v691_v21 = vpop.permute.xlu1 %690  ;;  %v689_v22 = vpop.permute.xlu0 %688 }
 0x545   :  { %v854_v48 = vsel %vm853_vm9, %v849_v46, %v689_v22  ;;  %v855_v58 = vsel %vm853_vm9, %v850_v56, %v691_v21 }
 0x548   :  { %v713_v23 = vpop.permute.xlu1 %712  ;;  %v701_v24 = vpop.permute.xlu0 %700 }
 0x549   :  { %v858_v37 = vsel %vm154_vm1, %v854_v48, %v701_v24 }
 0x54a   :  { %v863_v49 = vsel %vm862_vm10, %v858_v37, %v713_v23 }
 0x54c   :  { %v725_v26 = vpop.permute.xlu1 %724  ;;  %v703_v27 = vpop.permute.xlu0 %702 }
 0x54d   :  { %v868_v50 = vsel %vm867_vm11, %v863_v49, %v725_v26  ;;  %v859_v15 = vsel %vm154_vm1, %v855_v58, %v703_v27 }
 0x550   :  { %v737_v30 = vpop.permute.xlu1 %736  ;;  %v715_v31 = vpop.permute.xlu0 %714 }
 0x551   :  { %v873_v47 = vsel %vm872_vm12, %v868_v50, %v737_v30  ;;  %v864_v34 = vsel %vm862_vm10, %v859_v15, %v715_v31 }
 0x554   :  { %v749_v32 = vpop.permute.xlu1 %748  ;;  %v727_v33 = vpop.permute.xlu0 %726 }
 0x555   :  { %v878_v53 = vsel %vm877_vm13, %v873_v47, %v749_v32  ;;  %v869_v16 = vsel %vm867_vm11, %v864_v34, %v727_v33 }
 0x558   :  { %v761_v35 = vpop.permute.xlu1 %760  ;;  %v739_v36 = vpop.permute.xlu0 %738 }
 0x559   :  { %v883_v55 = vsel %vm882_vm14, %v878_v53, %v761_v35  ;;  %v874_v0 = vsel %vm872_vm12, %v869_v16, %v739_v36 }
 0x55c   :  { %v773_v38 = vpop.permute.xlu1 %772  ;;  %v751_v39 = vpop.permute.xlu0 %750 }
 0x55d   :  { %v888_v57 = vsel %vm887_vm15, %v883_v55, %v773_v38  ;;  %v879_v2 = vsel %vm877_vm13, %v874_v0, %v751_v39 }
 0x560   :  { %v785_v40 = vpop.permute.xlu1 %784  ;;  %v763_v42 = vpop.permute.xlu0 %762 }
 0x561   :  { %v893_v10 = vsel %vm892_vm2, %v888_v57, %v785_v40  ;;  %v884_v5 = vsel %vm882_vm14, %v879_v2, %v763_v42 }
 0x564   :  { %v797_v52 = vpop.permute.xlu1 %796  ;;  %v775_v13 = vpop.permute.xlu0 %774 }
 0x565   :  { %v898_v60 = vsel %vm897_vm3, %v893_v10, %v797_v52  ;;  %v889_v6 = vsel %vm887_vm15, %v884_v5, %v775_v13 }
 0x568   :  { %v809_v51 = vpop.permute.xlu1 %808  ;;  %v787_v45 = vpop.permute.xlu0 %786 }
 0x569   :  { %v903_v11 = vsel %vm902_vm5, %v898_v60, %v809_v51  ;;  %v894_v59 = vsel %vm892_vm2, %v889_v6, %v787_v45 }
 0x56c   :  { %v821_v14 = vpop.permute.xlu1 %820  ;;  %v799_v9 = vpop.permute.xlu0 %798 }
 0x56d   :  { %v908_v62 = vsel %vm907_vm6, %v903_v11, %v821_v14  ;;  %v899_v61 = vsel %vm897_vm3, %v894_v59, %v799_v9 }
 0x570   :  { %v833_v63 = vpop.permute.xlu1 %832  ;;  %v811_v12 = vpop.permute.xlu0 %810 }
 0x571   :  { %v913_v1 = vsel %vm912_vm7, %v908_v62, %v833_v63  ;;  %v904_v19 = vsel %vm902_vm5, %v899_v61, %v811_v12 }
 0x572   :  { %v917_v4 = vmul.f32 %v2190_v3, %v913_v1 }
 0x574   :  { %v669_v7 = vpop.permute.xlu1 %668  ;;  %1878 = vmatprep.mubr.f32.mxu1 %v917_v4  ;;  %v823_v8 = vpop.permute.xlu0 %822 }
 0x575   :  { %v909_v20 = vsel %vm907_vm6, %v904_v19, %v823_v8  ;;  %v846_v45 = vsel %vm449_vm4, %v2551_v17, %v669_v7 }
 0x578   :  { %v681_v21 = vpop.permute.xlu1 %680  ;;  %v835_v22 = vpop.permute.xlu0 %834 }
 0x579   :  { %v914_v23 = vsel %vm912_vm7, %v909_v20, %v835_v22  ;;  %v851_v53 = vsel %vm848_vm8, %v846_v45, %v681_v21  ;;  %v1105_v45 = vld [vmem:[%s3016_s11 + $0x30] sm:$0xff] }
 0x57a   :  { %v918_v24 = vmul.f32 %v914_v23, %v2332_v25  ;;  %v2191_v23 = vld [vmem:[%s3008_s0 + $0x18] sm:$0xff] }
 0x57c   :  { %v693_v26 = vpop.permute.xlu1 %692  ;;  %1879 = vmatmul.mubr.f32.vlgmr.msra.gmra.mrb[6].mxu1 %v918_v24  ;;  %v671_v27 = vpop.permute.xlu0 %670 }
 0x57d   :  { %v847_v50 = vsel %vm449_vm4, %v2562_v18, %v671_v27  ;;  %v856_v57 = vsel %vm853_vm9, %v851_v53, %v693_v26  ;;  %v2192_v26 = vld [vmem:[%s3008_s0 + $0x10] sm:$0xff] }
 0x580   :  { %v705_v30 = vpop.permute.xlu1 %704  ;;  %v683_v31 = vpop.permute.xlu0 %682 }
 0x581   :  { %v852_v51 = vsel %vm848_vm8, %v847_v50, %v683_v31  ;;  %v860_v9 = vsel %vm154_vm1, %v856_v57, %v705_v30  ;;  %v1676_v30 = vld [vmem:[%s3015_s8] ss:$0 sm:$0xff]  ;;  %v1104_v50 = vld [vmem:[%s3016_s11 + $0x28] sm:$0xff]  ;;  %v1109_v57 = vld [vmem:[%s3016_s11 + $0x50] sm:$0xff] }
 0x584   :  { %v717_v32 = vpop.permute.xlu1 %716  ;;  %v695_v33 = vpop.permute.xlu0 %694 }
 0x585   :  { %v857_v47 = vsel %vm853_vm9, %v852_v51, %v695_v33  ;;  %v865_v58 = vsel %vm862_vm10, %v860_v9, %v717_v32 }
 0x588   :  { %v729_v35 = vpop.permute.xlu1 %728  ;;  %v707_v36 = vpop.permute.xlu0 %706 }
 0x589   :  { %v861_v54 = vsel %vm154_vm1, %v857_v47, %v707_v36  ;;  %v870_v10 = vsel %vm867_vm11, %v865_v58, %v729_v35  ;;  %v1106_v47 = vld [vmem:[%s3016_s11 + $0x38] sm:$0xff]  ;;  %v1112_v58 = vld [vmem:[%s3016_s11 + $0x68] sm:$0xff] }
 0x58a   :  { %v2752_v53 = vpack.c.bf16 %v1106_v47, %v1105_v45 }
 0x58c   :  { %v741_v38 = vpop.permute.xlu1 %740  ;;  %v719_v39 = vpop.permute.xlu0 %718 }
 0x58d   :  { %v866_v14 = vsel %vm862_vm10, %v861_v54, %v719_v39  ;;  %v875_v11 = vsel %vm872_vm12, %v870_v10, %v741_v38  ;;  %v1107_v54 = vld [vmem:[%s3016_s11 + $0x40] sm:$0xff]  ;;  %v1113_v10 = vld [vmem:[%s3016_s11 + $0x70] sm:$0xff] }
 0x590   :  { %v753_v40 = vpop.permute.xlu1 %752  ;;  %v731_v42 = vpop.permute.xlu0 %730 }
 0x591   :  { %v871_v18 = vsel %vm867_vm11, %v866_v14, %v731_v42  ;;  %v880_v62 = vsel %vm877_vm13, %v875_v11, %v753_v40  ;;  %v1110_v14 = vld [vmem:[%s3016_s11 + $0x58] sm:$0xff] }
 0x592   :  { %v2772_v9 = vpack.c.bf16 %v1110_v14, %v1109_v57 }
 0x594   :  { %v765_v43 = vpop.permute.xlu1 %764  ;;  %v743_v46 = vpop.permute.xlu0 %742 }
 0x595   :  { %v876_v17 = vsel %vm872_vm12, %v871_v18, %v743_v46  ;;  %v885_v12 = vsel %vm882_vm14, %v880_v62, %v765_v43  ;;  %v1099_v43 = vld [vmem:[%s3016_s11] sm:$0xff]  ;;  %v1100_v46 = vld [vmem:[%s3016_s11 + $0x8] sm:$0xff] }
 0x596   :  { %v1111_v18 = vld [vmem:[%s3016_s11 + $0x60] sm:$0xff] }
 0x598   :  { %v777_v48 = vpop.permute.xlu1 %776  ;;  %v755_v37 = vpop.permute.xlu0 %754 }
 0x599   :  { %v881_v15 = vsel %vm877_vm13, %v876_v17, %v755_v37  ;;  %v890_v1 = vsel %vm887_vm15, %v885_v12, %v777_v48  ;;  %v2718_v37 = vpack.c.bf16 %v1100_v46, %v1099_v43  ;;  %v2782_v17 = vpack.c.bf16 %v1112_v58, %v1111_v18  ;;  %v2813_v12 = vld [vmem:[%s3017_s10] sm:$0x1] }
 0x59c   :  { %v789_v52 = vpop.permute.xlu1 %788  ;;  %v767_v13 = vpop.permute.xlu0 %766 }
 0x59d   :  { %v886_v16 = vsel %vm882_vm14, %v881_v15, %v767_v13  ;;  %v895_v4 = vsel %vm892_vm2, %v890_v1, %v789_v52  ;;  %v1101_v52 = vld [vmem:[%s3016_s11 + $0x10] sm:$0xff]  ;;  %v1102_v13 = vld [vmem:[%s3016_s11 + $0x18] sm:$0xff] }
 0x59e   :  { %v1114_v15 = vld [vmem:[%s3016_s11 + $0x78] sm:$0xff] }
 0x5a0   :  { %v801_v25 = vpop.permute.xlu1 %800  ;;  %v779_v49 = vpop.permute.xlu0 %778 }
 0x5a1   :  { %v891_v63 = vsel %vm887_vm15, %v886_v16, %v779_v49  ;;  %v900_v5 = vsel %vm897_vm3, %v895_v4, %v801_v25  ;;  %v2730_v25 = vpack.c.bf16 %v1102_v13, %v1101_v52  ;;  %v1103_v49 = vld [vmem:[%s3016_s11 + $0x20] sm:$0xff] }
 0x5a2   :  { %v2742_v51 = vpack.c.bf16 %v1104_v50, %v1103_v49 }
 0x5a4   :  { %v803_v55 = vpop.permute.xlu1 %802  ;;  %v791_v56 = vpop.permute.xlu0 %790 }
 0x5a5   :  { %v896_v0 = vsel %vm892_vm2, %v891_v63, %v791_v56 }
 0x5a6   :  { %v901_v6 = vsel %vm897_vm3, %v896_v0, %v803_v55  ;;  %v1108_v55 = vld [vmem:[%s3016_s11 + $0x48] sm:$0xff]  ;;  %v2817_v0 = vrot.slane %v2813_v12, %v2356_v44 }
 0x5a7   :  { %v2762_v56 = vpack.c.bf16 %v1108_v55, %v1107_v54 }
 0x5a8   :  { %v815_v60 = vpop.permute.xlu1 %814  ;;  %v813_v34 = vpop.permute.xlu0 %812 }
 0x5a9   :  { %v906_v7 = vsel %vm902_vm5, %v901_v6, %v815_v60  ;;  %v905_v8 = vsel %vm902_vm5, %v900_v5, %v813_v34  ;;  %v2792_v60 = vpack.c.bf16 %v1114_v15, %v1113_v10 }
 0x5ac   :  { %v827_v2 = vpop.permute.xlu1 %826  ;;  %v825_v3 = vpop.permute.xlu0 %824 }
 0x5ad   :  { %v911_v59 = vsel %vm907_vm6, %v906_v7, %v827_v2  ;;  %v910_v61 = vsel %vm907_vm6, %v905_v8, %v825_v3 }
 0x5b0   :  { %v839_v19 = vpop.permute.xlu1 %838  ;;  %v837_v20 = vpop.permute.xlu0 %836 }
 0x5b1   :  { %v916_v21 = vsel %vm912_vm7, %v911_v59, %v839_v19  ;;  %v915_v22 = vsel %vm912_vm7, %v910_v61, %v837_v20 }
 0x5b2   :  { %v920_v24 = vmul.f32 %v2191_v23, %v916_v21  ;;  %v919_v27 = vmul.f32 %v2192_v26, %v915_v22 }
 0x5b4   :  { %1881 = vmatprep.mubr.f32.mxu1 %v919_v27 }
 0x5b5   :  { %1882 = vmatmul.mubr.f32.gmra.mrb[8].mxu1 %v920_v24 }
 0x5b6   :  { %1938 = vmatprep.mubr.msk.f32.mxu1 %vm2194_vm0, %v2195_v29 }
 0x64f   :  { %v1880_v31 = vpop.f32.mrb[6].mxu1 }
 0x650   :  { %v2699_v32 = vadd.f32 %v1880_v31, %v1676_v30  ;;  %v1010_v33 = vpop.f32.mrb[7].mxu1 }
 0x651   :  { %v2701_v35 = vadd.f32 %v1676_v30, %v1010_v33 }
 0x653   :  { %v2053_v36 = vpack.c.bf16 %v2699_v32, %v2701_v35 }
 0x655   :  { %2054 = vmatpush3.bf16.msra.mxu0 %v2053_v36 }
 0x656   :  { %2055 = vmatprep.subr.bf16.mxu0 %v2193_v28 }
 0x688   :  { %v1883_v38 = vpop.f32.mrb[8].mxu1 }
 0x689   :  { %v2706_v39 = vadd.f32 %v1883_v38, %v1676_v30  ;;  %v1020_v40 = vpop.f32.mrb[9].mxu1 }
 0x68a   :  { %v2708_v42 = vadd.f32 %v1676_v30, %v1020_v40 }
 0x68c   :  { %v2056_v48 = vpack.c.bf16 %v2706_v39, %v2708_v42 }
 0x68e   :  { %2057 = vmatpush3.bf16.msra.mxu0 %v2056_v48 }
 0x68f   :  { %2058 = vmatprep.subr.bf16.mxu0 %v2193_v28 }
 0x691   :  { %1893 = vmatmul.mubr.msk.f32.vlgmr.msra.gmra.mrb[6].mxu0 %vm154_vm1, %v2196_v41 }
 0x692   :  { %2060 = vmatpush3.bf16.msra.mxu0 %v2718_v37  ;;  %1927 = vmatprep.mubr.msk.f32.mxu0 %vm2194_vm0, %v2195_v29 }
 0x693   :  { %2061 = vmatprep.subr.bf16.mxu0 %v2193_v28 }
 0x696   :  { %2063 = vmatpush3.bf16.msra.mxu0 %v2730_v25 }
 0x697   :  { %2064 = vmatprep.subr.bf16.mxu0 %v2193_v28 }
 0x69a   :  { %2066 = vmatpush3.bf16.msra.mxu0 %v2742_v51 }
 0x69b   :  { %2067 = vmatprep.subr.bf16.mxu0 %v2193_v28 }
 0x69e   :  { %2069 = vmatpush3.bf16.msra.mxu0 %v2752_v53 }
 0x69f   :  { %2070 = vmatprep.subr.bf16.mxu0 %v2193_v28 }
 0x6a2   :  { %2072 = vmatpush3.bf16.msra.mxu0 %v2762_v56 }
 0x6a3   :  { %2073 = vmatprep.subr.bf16.mxu0 %v2193_v28 }
 0x6a6   :  { %2075 = vmatpush3.bf16.msra.mxu0 %v2772_v9 }
 0x6a7   :  { %2076 = vmatprep.subr.bf16.mxu0 %v2193_v28 }
 0x6aa   :  { %2078 = vmatpush3.bf16.msra.mxu0 %v2782_v17 }
 0x6ab   :  { %2079 = vmatprep.subr.bf16.mxu0 %v2193_v28 }
 0x6ae   :  { %2081 = vmatpush3.bf16.msra.mxu0 %v2792_v60 }
 0x764   :  { %v1095_v34 = vpop.f32.mrb[6].mxu0 }
 0x765   :  { %v1894_v11 = vpop.f32.mrb[7].mxu0  ;;  %1928 = vmatmul.mubr.f32.vlgmr.msra.gmra.mrb[8].mxu0 %v1095_v34 }
 0x838   :  { %v1181_v16 = vpop.f32.mrb[8].mxu0 }
 0x839   :  { %v1186_v62 = vmul.f32 0.001953125, %v1181_v16  ;;  %v1929_v63 = vpop.f32.mrb[9].mxu0 }
 0x83b   :  { %1191 = vrot.lane.b32.xlu1 %v1186_v62, %s2199_s6  ;;  %1188 = vrot.lane.b32.xlu0 %v1186_v62, %s2198_s5 }
 0x83f   :  { %1197 = vrot.lane.b32.xlu1 %v1186_v62, %s2202_s15  ;;  %1194 = vrot.lane.b32.xlu0 %v1186_v62, %s2200_s13 }
 0x843   :  { %1203 = vrot.lane.b32.xlu1 %v1186_v62, %s2203_s16  ;;  %1200 = vrot.lane.b32.xlu0 %v1186_v62, %s2201_s14 }
 0x847   :  { %1209 = vrot.lane.b32.xlu1 %v1186_v62, %s2205_s28  ;;  %1206 = vrot.lane.b32.xlu0 %v1186_v62, %s2204_s24 }
 0x84b   :  { %1215 = vrot.lane.b32.xlu1 %v1186_v62, %s2207_s22  ;;  %1212 = vrot.lane.b32.xlu0 %v1186_v62, %s2206_s17 }
 0x84f   :  { %1221 = vrot.lane.b32.xlu1 %v1186_v62, %s2209_s27  ;;  %1218 = vrot.lane.b32.xlu0 %v1186_v62, %s2208_s26 }
 0x853   :  { %1227 = vrot.lane.b32.xlu1 %v1186_v62, %s2211_s1  ;;  %1224 = vrot.lane.b32.xlu0 %v1186_v62, %s2210_s23 }
 0x857   :  { %1230 = vrot.lane.b32.xlu0 %v1186_v62, %s2212_s7 }
 0x85b   :  { %1484 = vrot.lane.b32.xlu0 %v2817_v0, %s2198_s5 }
 0x85f   :  { %1487 = vrot.lane.b32.xlu0 %v2817_v0, %s2199_s6 }
 0x863   :  { %1490 = vrot.lane.b32.xlu0 %v2817_v0, %s2200_s13 }
 0x867   :  { %1493 = vrot.lane.b32.xlu0 %v2817_v0, %s2202_s15 }
 0x86b   :  { %1496 = vrot.lane.b32.xlu0 %v2817_v0, %s2201_s14 }
 0x86f   :  { %1499 = vrot.lane.b32.xlu0 %v2817_v0, %s2203_s16 }
 0x873   :  { %1502 = vrot.lane.b32.xlu0 %v2817_v0, %s2204_s24 }
 0x877   :  { %1505 = vrot.lane.b32.xlu0 %v2817_v0, %s2205_s28 }
 0x87b   :  { %1508 = vrot.lane.b32.xlu0 %v2817_v0, %s2206_s17 }
 0x87f   :  { %1511 = vrot.lane.b32.xlu0 %v2817_v0, %s2207_s22 }
 0x8ad   :  { %v1192_v1 = vpop.permute.xlu1 %1191  ;;  %v1189_v2 = vpop.permute.xlu0 %1188 }
 0x8ae   :  { %v1233_v3 = vsel %vm449_vm4, %v1186_v62, %v1189_v2 }
 0x8af   :  { %v1234_v5 = vsel %vm848_vm8, %v1233_v3, %v1192_v1 }
 0x8b1   :  { %v1198_v4 = vpop.permute.xlu1 %1197  ;;  %v1195_v6 = vpop.permute.xlu0 %1194 }
 0x8b2   :  { %v1235_v7 = vsel %vm853_vm9, %v1234_v5, %v1195_v6 }
 0x8b3   :  { %v1236_v59 = vsel %vm154_vm1, %v1235_v7, %v1198_v4 }
 0x8b5   :  { %v1204_v8 = vpop.permute.xlu1 %1203  ;;  %v1201_v61 = vpop.permute.xlu0 %1200 }
 0x8b6   :  { %v1237_v19 = vsel %vm862_vm10, %v1236_v59, %v1201_v61 }
 0x8b7   :  { %v1238_v21 = vsel %vm867_vm11, %v1237_v19, %v1204_v8 }
 0x8b9   :  { %v1210_v20 = vpop.permute.xlu1 %1209  ;;  %v1207_v22 = vpop.permute.xlu0 %1206 }
 0x8ba   :  { %v1239_v23 = vsel %vm872_vm12, %v1238_v21, %v1207_v22 }
 0x8bb   :  { %v1240_v26 = vsel %vm877_vm13, %v1239_v23, %v1210_v20 }
 0x8bd   :  { %v1216_v24 = vpop.permute.xlu1 %1215  ;;  %v1213_v27 = vpop.permute.xlu0 %1212 }
 0x8be   :  { %v1241_v30 = vsel %vm882_vm14, %v1240_v26, %v1213_v27 }
 0x8bf   :  { %v1242_v33 = vsel %vm887_vm15, %v1241_v30, %v1216_v24 }
 0x8c1   :  { %v1222_v31 = vpop.permute.xlu1 %1221  ;;  %v1219_v36 = vpop.permute.xlu0 %1218 }
 0x8c2   :  { %v1243_v38 = vsel %vm892_vm2, %v1242_v33, %v1219_v36 }
 0x8c3   :  { %v1244_v40 = vsel %vm897_vm3, %v1243_v38, %v1222_v31 }
 0x8c5   :  { %v1225_v43 = vpop.permute.xlu0 %1224  ;;  %v1228_v46 = vpop.permute.xlu1 %1227 }
 0x8c6   :  { %v1245_v48 = vsel %vm902_vm5, %v1244_v40, %v1225_v43 }
 0x8c7   :  { %v1246_v52 = vsel %vm907_vm6, %v1245_v48, %v1228_v46 }
 0x8c9   :  { %v1231_v13 = vpop.permute.xlu0 %1230 }
 0x8ca   :  { %v1247_v49 = vsel %vm912_vm7, %v1246_v52, %v1231_v13 }
 0x8cb   :  { %v1251_v50 = vrot.slane %v1247_v49, %v2356_v44 }
 0x8cd   :  { %v2857_v45 = vsub.f32 %v2701_v35, %v1251_v50  ;;  %v2860_v47 = vsub.f32 %v2699_v32, %v1251_v50  ;;  %v2863_v54 = vsub.f32 %v2708_v42, %v1251_v50  ;;  %v2866_v55 = vsub.f32 %v2706_v39, %v1251_v50 }
 0x8cf   :  { %v1256_v57 = vmul.f32 %v2857_v45, %v2857_v45  ;;  %v1257_v14 = vmul.f32 %v2860_v47, %v2860_v47  ;;  %v1258_v35 = vmul.f32 %v2863_v54, %v2863_v54  ;;  %v1259_v32 = vmul.f32 %v2866_v55, %v2866_v55 }
 0x8d1   :  { %v2083_v18 = vpack.c.bf16 %v1257_v14, %v1256_v57  ;;  %v2086_v42 = vpack.c.bf16 %v1259_v32, %v1258_v35 }
 0x8d3   :  { %2084 = vmatpush3.bf16.msra.mxu1 %v2083_v18 }
 0x8d4   :  { %2085 = vmatprep.subr.bf16.mxu1 %v2193_v28 }
 0x8d7   :  { %2087 = vmatpush3.bf16.msra.mxu1 %v2086_v42 }
 0x8d8   :  { %2088 = vmatprep.subr.bf16.mxu1 %v2193_v28 }
 0x8da   :  { %1939 = vmatmul.mubr.msk.f32.vlgmr.msra.gmra.mrb[10].mxu1 %vm154_vm1, %v2196_v41 }
 0x8db   :  { %2090 = vmatpush3.bf16.msra.mxu1 %v2718_v37  ;;  %1973 = vmatprep.mubr.msk.f32.mxu1 %vm2194_vm0, %v2195_v29 }
 0x8dc   :  { %2091 = vmatprep.subr.bf16.mxu1 %v2193_v28 }
 0x8df   :  { %2093 = vmatpush3.bf16.msra.mxu1 %v2730_v25 }
 0x8e0   :  { %2094 = vmatprep.subr.bf16.mxu1 %v2193_v28 }
 0x8e3   :  { %2096 = vmatpush3.bf16.msra.mxu1 %v2742_v51 }
 0x8e4   :  { %2097 = vmatprep.subr.bf16.mxu1 %v2193_v28 }
 0x8e7   :  { %2099 = vmatpush3.bf16.msra.mxu1 %v2752_v53  ;;  %v1401_v53 = vld [vmem:[%s3018_s9] sm:$0x1] }
 0x8e8   :  { %2100 = vmatprep.subr.bf16.mxu1 %v2193_v28 }
 0x8eb   :  { %2102 = vmatpush3.bf16.msra.mxu1 %v2762_v56 }
 0x8ec   :  { %2103 = vmatprep.subr.bf16.mxu1 %v2193_v28 }
 0x8ef   :  { %2105 = vmatpush3.bf16.msra.mxu1 %v2772_v9 }
 0x8f0   :  { %2106 = vmatprep.subr.bf16.mxu1 %v2193_v28 }
 0x8f3   :  { %2108 = vmatpush3.bf16.msra.mxu1 %v2782_v17 }
 0x8f4   :  { %2109 = vmatprep.subr.bf16.mxu1 %v2193_v28  ;;  %v1485_v28 = vpop.permute.xlu0 %1484 }
 0x8f5   :  { %v1529_v4 = vsel %vm449_vm4, %v2813_v12, %v1485_v28 }
 0x8f7   :  { %2111 = vmatpush3.bf16.msra.mxu1 %v2792_v60 }
 0x8f8   :  { %v1488_v17 = vpop.permute.xlu0 %1487 }
 0x8fc   :  { %v1491_v10 = vpop.permute.xlu0 %1490 }
 0x900   :  { %v1494_v15 = vpop.permute.xlu0 %1493 }
 0x904   :  { %v1497_v60 = vpop.permute.xlu0 %1496 }
 0x908   :  { %v1500_v11 = vpop.permute.xlu0 %1499 }
 0x90c   :  { %v1503_v63 = vpop.permute.xlu0 %1502 }
 0x910   :  { %v1506_v2 = vpop.permute.xlu0 %1505 }
 0x914   :  { %v1509_v6 = vpop.permute.xlu0 %1508 }
 0x918   :  { %v1512_v59 = vpop.permute.xlu0 %1511 }
 0x9ad   :  { %v1326_v29 = vpop.f32.mrb[10].mxu1 }
 0x9ae   :  { %v1940_v41 = vpop.f32.mrb[11].mxu1  ;;  %1974 = vmatmul.mubr.f32.vlgmr.msra.gmra.mrb[12].mxu1 %v1326_v29 }
 0xa81   :  { %v1396_v39 = vpop.f32.mrb[12].mxu1 }
 0xa82   :  { %v1400_v37 = vmul.f32 0.001953125, %v1396_v39  ;;  %v1975_v25 = vpop.f32.mrb[13].mxu1 }
 0xa84   :  { %v1402_v51 = vadd.f32 1e-05, %v1400_v37 }
 0xa86   :  { %2172 = vrsqrt.f32 %v1402_v51 }
 0xa90   :  { %v2173_v56 = vpop.eup %2172 }
 0xa91   :  { %v1404_v9 = vmul.f32 %v2173_v56, %v1401_v53 }
 0xa93   :  { %v1409_v58 = vrot.slane %v1404_v9, %v2356_v44 }
 0xa95   :  { %1410 = vrot.lane.b32.xlu1 %v1409_v58, %s2198_s5  ;;  %1413 = vrot.lane.b32.xlu0 %v1409_v58, %s2199_s6 }
 0xa99   :  { %1416 = vrot.lane.b32.xlu1 %v1409_v58, %s2200_s13  ;;  %1514 = vrot.lane.b32.xlu0 %v2817_v0, %s2208_s26 }
 0xa9d   :  { %1419 = vrot.lane.b32.xlu1 %v1409_v58, %s2202_s15  ;;  %1517 = vrot.lane.b32.xlu0 %v2817_v0, %s2209_s27 }
 0xaa1   :  { %1422 = vrot.lane.b32.xlu1 %v1409_v58, %s2201_s14  ;;  %1520 = vrot.lane.b32.xlu0 %v2817_v0, %s2210_s23 }
 0xaa5   :  { %1425 = vrot.lane.b32.xlu1 %v1409_v58, %s2203_s16  ;;  %1526 = vrot.lane.b32.xlu0 %v2817_v0, %s2212_s7 }
 0xaa9   :  { %1428 = vrot.lane.b32.xlu1 %v1409_v58, %s2204_s24 }
 0xaad   :  { %1431 = vrot.lane.b32.xlu1 %v1409_v58, %s2205_s28 }
 0xab1   :  { %1434 = vrot.lane.b32.xlu1 %v1409_v58, %s2206_s17 }
 0xab5   :  { %1437 = vrot.lane.b32.xlu1 %v1409_v58, %s2207_s22 }
 0xab9   :  { %1440 = vrot.lane.b32.xlu1 %v1409_v58, %s2208_s26 }
 0xabd   :  { %1443 = vrot.lane.b32.xlu1 %v1409_v58, %s2209_s27 }
 0xac1   :  { %1446 = vrot.lane.b32.xlu1 %v1409_v58, %s2210_s23 }
 0xac5   :  { %1449 = vrot.lane.b32.xlu1 %v1409_v58, %s2211_s1 }
 0xac9   :  { %1452 = vrot.lane.b32.xlu1 %v1409_v58, %s2212_s7 }
 0xacd   :  { %1523 = vrot.lane.b32.xlu1 %v2817_v0, %s2211_s1  ;;  %v1530_v0 = vsel %vm848_vm8, %v1529_v4, %v1488_v17 }
 0xace   :  { %v1531_v8 = vsel %vm853_vm9, %v1530_v0, %v1491_v10 }
 0xacf   :  { %v1532_v19 = vsel %vm154_vm1, %v1531_v8, %v1494_v15 }
 0xad0   :  { %v1533_v20 = vsel %vm862_vm10, %v1532_v19, %v1497_v60 }
 0xad1   :  { %v1534_v23 = vsel %vm867_vm11, %v1533_v20, %v1500_v11 }
 0xad2   :  { %v1535_v26 = vsel %vm872_vm12, %v1534_v23, %v1503_v63 }
 0xad3   :  { %v1536_v33 = vsel %vm877_vm13, %v1535_v26, %v1506_v2 }
 0xad4   :  { %v1537_v43 = vsel %vm882_vm14, %v1536_v33, %v1509_v6 }
 0xad5   :  { %v1538_v50 = vsel %vm887_vm15, %v1537_v43, %v1512_v59 }
 0xb07   :  { %v1411_v34 = vpop.permute.xlu1 %1410  ;;  %v1414_v22 = vpop.permute.xlu0 %1413 }
 0xb08   :  { %v1455_v12 = vsel %vm449_vm4, %v1404_v9, %v1411_v34 }
 0xb09   :  { %v1456_v30 = vsel %vm848_vm8, %v1455_v12, %v1414_v22 }
 0xb0b   :  { %v1417_v16 = vpop.permute.xlu1 %1416  ;;  %v1515_v27 = vpop.permute.xlu0 %1514 }
 0xb0c   :  { %v1457_v36 = vsel %vm853_vm9, %v1456_v30, %v1417_v16  ;;  %v1539_v32 = vsel %vm892_vm2, %v1538_v50, %v1515_v27 }
 0xb0f   :  { %v1420_v62 = vpop.permute.xlu1 %1419  ;;  %v1518_v52 = vpop.permute.xlu0 %1517 }
 0xb10   :  { %v1458_v38 = vsel %vm154_vm1, %v1457_v36, %v1420_v62  ;;  %v1540_v25 = vsel %vm897_vm3, %v1539_v32, %v1518_v52 }
 0xb13   :  { %v1423_v1 = vpop.permute.xlu1 %1422  ;;  %v1521_v29 = vpop.permute.xlu0 %1520 }
 0xb14   :  { %v1459_v40 = vsel %vm862_vm10, %v1458_v38, %v1423_v1  ;;  %v1541_v9 = vsel %vm902_vm5, %v1540_v25, %v1521_v29 }
 0xb17   :  { %v1426_v3 = vpop.permute.xlu1 %1425  ;;  %v1527_v56 = vpop.permute.xlu0 %1526 }
 0xb18   :  { %v1460_v46 = vsel %vm867_vm11, %v1459_v40, %v1426_v3 }
 0xb1b   :  { %v1429_v5 = vpop.permute.xlu1 %1428 }
 0xb1c   :  { %v1461_v13 = vsel %vm872_vm12, %v1460_v46, %v1429_v5 }
 0xb1f   :  { %v1432_v7 = vpop.permute.xlu1 %1431 }
 0xb20   :  { %v1462_v49 = vsel %vm877_vm13, %v1461_v13, %v1432_v7 }
 0xb23   :  { %v1435_v61 = vpop.permute.xlu1 %1434 }
 0xb24   :  { %v1463_v57 = vsel %vm882_vm14, %v1462_v49, %v1435_v61 }
 0xb27   :  { %v1438_v21 = vpop.permute.xlu1 %1437 }
 0xb28   :  { %v1464_v14 = vsel %vm887_vm15, %v1463_v57, %v1438_v21 }
 0xb2b   :  { %v1441_v24 = vpop.permute.xlu1 %1440 }
 0xb2c   :  { %v1465_v35 = vsel %vm892_vm2, %v1464_v14, %v1441_v24 }
 0xb2f   :  { %v1444_v31 = vpop.permute.xlu1 %1443 }
 0xb30   :  { %v1466_v42 = vsel %vm897_vm3, %v1465_v35, %v1444_v31 }
 0xb33   :  { %v1447_v48 = vpop.permute.xlu1 %1446 }
 0xb34   :  { %v1467_v41 = vsel %vm902_vm5, %v1466_v42, %v1447_v48 }
 0xb37   :  { %v1450_v18 = vpop.permute.xlu1 %1449 }
 0xb38   :  { %v1468_v39 = vsel %vm907_vm6, %v1467_v41, %v1450_v18 }
 0xb3b   :  { %v1453_v37 = vpop.permute.xlu1 %1452 }
 0xb3c   :  { %v1469_v51 = vsel %vm912_vm7, %v1468_v39, %v1453_v37 }
 0xb3d   :  { %v1473_v53 = vrot.slane %v1469_v51, %v2356_v44 }
 0xb3f   :  { %v1524_v58 = vpop.permute.xlu1 %1523  ;;  %v1474_v17 = vmul.f32 %v1473_v53, %v2857_v45  ;;  %v1475_v15 = vmul.f32 %v1473_v53, %v2860_v47  ;;  %v1476_v60 = vmul.f32 %v1473_v53, %v2863_v54  ;;  %v1477_v34 = vmul.f32 %v1473_v53, %v2866_v55 }
 0xb40   :  { %v1542_v28 = vsel %vm907_vm6, %v1541_v9, %v1524_v58 }
 0xb41   :  { %v1543_v10 = vsel %vm912_vm7, %v1542_v28, %v1527_v56 }
 0xb42   :  { %v1547_v11 = vrot.slane %v1543_v10, %v2356_v44 }
 0xb44   :  { %v2963_v16 = vadd.f32 %v1547_v11, %v1474_v17  ;;  %v2965_v62 = vadd.f32 %v1547_v11, %v1475_v15  ;;  %v2967_v63 = vadd.f32 %v1547_v11, %v1476_v60  ;;  %v2969_v1 = vadd.f32 %v1547_v11, %v1477_v34 }
 0xb46   :  { %v2972_v45 = vmul.f32 0.70710677, %v2963_v16  ;;  %v2975_v2 = vmul.f32 0.70710677, %v2965_v62  ;;  %v2978_v47 = vmul.f32 0.70710677, %v2967_v63 }
 0xb47   :  { %v2981_v54 = vmul.f32 0.70710677, %v2969_v1 }
 0xb48   :  { %v1560_v44 = vand.u32 2147483647, %v2972_v45  ;;  %v1561_v55 = vand.u32 2147483647, %v2975_v2  ;;  %v1562_v3 = vand.u32 2147483647, %v2978_v47 }
 0xb49   :  { %v1563_v4 = vand.u32 2147483647, %v2981_v54  ;;  %vm1640_vm0 = vcmp.ge.f32.partialorder %v2972_v45, 0.0  ;;  %vm1641_vm1 = vcmp.ge.f32.partialorder %v2975_v2, 0.0  ;;  %vm1642_vm4 = vcmp.ge.f32.partialorder %v2978_v47, 0.0 }
 0xb4a   :  { %v1564_v5 = vmul.f32 0.3275911, %v1560_v44  ;;  %v1565_v6 = vmul.f32 0.3275911, %v1561_v55  ;;  %v1566_v0 = vmul.f32 0.3275911, %v1562_v3 }
 0xb4b   :  { %v1567_v7 = vmul.f32 0.3275911, %v1563_v4  ;;  %v1616_v20 = vsub.f32 0.0, %v1560_v44  ;;  %v1617_v21 = vsub.f32 0.0, %v1561_v55  ;;  %v1618_v22 = vsub.f32 0.0, %v1562_v3 }
 0xb4c   :  { %v1568_v8 = vadd.f32 1.0, %v1564_v5  ;;  %v1569_v59 = vadd.f32 1.0, %v1565_v6  ;;  %v1570_v61 = vadd.f32 1.0, %v1566_v0  ;;  %v1619_v23 = vsub.f32 0.0, %v1563_v4 }
 0xb4d   :  { %v1571_v19 = vadd.f32 1.0, %v1567_v7  ;;  %v1620_v12 = vmul.f32 %v1616_v20, %v1560_v44  ;;  %v1621_v30 = vmul.f32 %v1617_v21, %v1561_v55  ;;  %v1622_v36 = vmul.f32 %v1618_v22, %v1562_v3 }
 0xb4e   :  { %2174 = vrcp.f32 %v1568_v8  ;;  %v1623_v46 = vmul.f32 %v1619_v23, %v1563_v4  ;;  %vm1643_vm8 = vcmp.ge.f32.partialorder %v2981_v54, 0.0  ;;  %v1554_v45 = vmul.f32 0.5, %v2967_v63 }
 0xb4f   :  { %2176 = vrcp.f32 %v1569_v59  ;;  %v1624_v13 = vmul.f32 1.442695, %v1620_v12  ;;  %v1626_v57 = vmul.f32 1.442695, %v1621_v30  ;;  %v1628_v35 = vmul.f32 1.442695, %v1622_v36 }
 0xb50   :  { %2178 = vrcp.f32 %v1570_v61  ;;  %v1630_v29 = vmul.f32 1.442695, %v1623_v46  ;;  %v1555_v2 = vmul.f32 0.5, %v2969_v1 }
 0xb51   :  { %2180 = vrcp.f32 %v1571_v19 }
 0xb52   :  { %2182 = vpow2.f32 %v1624_v13 }
 0xb53   :  { %2184 = vpow2.f32 %v1626_v57 }
 0xb54   :  { %2186 = vpow2.f32 %v1628_v35 }
 0xb55   :  { %2188 = vpow2.f32 %v1630_v29 }
 0xb58   :  { %v2175_v24 = vpop.eup %2174 }
 0xb59   :  { %v2177_v26 = vpop.eup %2176  ;;  %v1580_v27 = vmul.f32 1.0614054, %v2175_v24 }
 0xb5a   :  { %v2179_v31 = vpop.eup %2178  ;;  %v1581_v33 = vmul.f32 1.0614054, %v2177_v26 }
 0xb5b   :  { %v2181_v38 = vpop.eup %2180  ;;  %v1582_v40 = vmul.f32 1.0614054, %v2179_v31  ;;  %v1584_v43 = vadd.f32 -1.4531521, %v1580_v27 }
 0xb5c   :  { %v1583_v48 = vmul.f32 1.0614054, %v2181_v38  ;;  %v1585_v52 = vadd.f32 -1.4531521, %v1581_v33  ;;  %v2183_v5 = vpop.eup %2182 }
 0xb5d   :  { %v1586_v49 = vadd.f32 -1.4531521, %v1582_v40  ;;  %v1588_v50 = vmul.f32 %v2175_v24, %v1584_v43  ;;  %v2185_v7 = vpop.eup %2184  ;;  %v1552_v40 = vmul.f32 0.5, %v2963_v16 }
 0xb5e   :  { %v1587_v14 = vadd.f32 -1.4531521, %v1583_v48  ;;  %v1589_v18 = vmul.f32 %v2177_v26, %v1585_v52  ;;  %v2187_v61 = vpop.eup %2186  ;;  %v1553_v48 = vmul.f32 0.5, %v2965_v62 }
 0xb5f   :  { %v1590_v32 = vmul.f32 %v2179_v31, %v1586_v49  ;;  %v1592_v42 = vadd.f32 1.4214138, %v1588_v50  ;;  %v2189_v21 = vpop.eup %2188 }
 0xb60   :  { %v1591_v41 = vmul.f32 %v2181_v38, %v1587_v14  ;;  %v1593_v39 = vadd.f32 1.4214138, %v1589_v18 }
 0xb61   :  { %v1594_v37 = vadd.f32 1.4214138, %v1590_v32  ;;  %v1596_v25 = vmul.f32 %v2175_v24, %v1592_v42 }
 0xb62   :  { %v1595_v51 = vadd.f32 1.4214138, %v1591_v41  ;;  %v1597_v53 = vmul.f32 %v2177_v26, %v1593_v39 }
 0xb63   :  { %v1598_v56 = vmul.f32 %v2179_v31, %v1594_v37  ;;  %v1600_v9 = vadd.f32 -0.28449672, %v1596_v25 }
 0xb64   :  { %v1599_v58 = vmul.f32 %v2181_v38, %v1595_v51  ;;  %v1601_v28 = vadd.f32 -0.28449672, %v1597_v53 }
 0xb65   :  { %v1602_v17 = vadd.f32 -0.28449672, %v1598_v56  ;;  %v1604_v10 = vmul.f32 %v2175_v24, %v1600_v9 }
 0xb66   :  { %v1603_v15 = vadd.f32 -0.28449672, %v1599_v58  ;;  %v1605_v60 = vmul.f32 %v2177_v26, %v1601_v28 }
 0xb67   :  { %v1606_v34 = vmul.f32 %v2179_v31, %v1602_v17  ;;  %v1608_v11 = vadd.f32 0.2548296, %v1604_v10 }
 0xb68   :  { %v1607_v44 = vmul.f32 %v2181_v38, %v1603_v15  ;;  %v1609_v55 = vadd.f32 0.2548296, %v1605_v60 }
 0xb69   :  { %v1610_v3 = vadd.f32 0.2548296, %v1606_v34  ;;  %v1612_v4 = vmul.f32 %v2175_v24, %v1608_v11 }
 0xb6a   :  { %v1611_v6 = vadd.f32 0.2548296, %v1607_v44  ;;  %v1613_v0 = vmul.f32 %v2177_v26, %v1609_v55 }
 0xb6b   :  { %v1614_v8 = vmul.f32 %v2179_v31, %v1610_v3  ;;  %v1632_v59 = vmul.f32 %v2183_v5, %v1612_v4 }
 0xb6c   :  { %v1615_v19 = vmul.f32 %v2181_v38, %v1611_v6  ;;  %v1633_v20 = vmul.f32 %v2185_v7, %v1613_v0 }
 0xb6d   :  { %v1634_v22 = vmul.f32 %v2187_v61, %v1614_v8  ;;  %v1636_v23 = vsub.f32 1.0, %v1632_v59 }
 0xb6e   :  { %v1635_v12 = vmul.f32 %v2189_v21, %v1615_v19  ;;  %v1637_v27 = vsub.f32 1.0, %v1633_v20 }
 0xb6f   :  { %v1638_v30 = vsub.f32 1.0, %v1634_v22  ;;  %v1644_v33 = vsub.f32 0.0, %v1636_v23 }
 0xb70   :  { %v1639_v36 = vsub.f32 1.0, %v1635_v12  ;;  %v1645_v24 = vsub.f32 0.0, %v1637_v27 }
 0xb71   :  { %v1646_v26 = vsub.f32 0.0, %v1638_v30  ;;  %v1648_v31 = vsel %vm1640_vm0, %v1636_v23, %v1644_v33 }
 0xb72   :  { %v1647_v38 = vsub.f32 0.0, %v1639_v36  ;;  %v1649_v43 = vsel %vm1641_vm1, %v1637_v27, %v1645_v24  ;;  %v1652_v46 = vadd.f32 1.0, %v1648_v31 }
 0xb73   :  { %v1650_v52 = vsel %vm1642_vm4, %v1638_v30, %v1646_v26  ;;  %v1653_v13 = vadd.f32 1.0, %v1649_v43 }
 0xb74   :  { %v1651_v49 = vsel %vm1643_vm8, %v1639_v36, %v1647_v38  ;;  %v1654_v50 = vadd.f32 1.0, %v1650_v52  ;;  %v1656_v16 = vmul.f32 %v1652_v46, %v1552_v40 }
 0xb75   :  { %v1655_v57 = vadd.f32 1.0, %v1651_v49  ;;  %v1657_v14 = vmul.f32 %v1653_v13, %v1553_v48 }
 0xb76   :  { %v1658_v18 = vmul.f32 %v1654_v50, %v1554_v45  ;;  %1660 = vst [vmem:[%s3019_s12] sm:$0xff] %v1656_v16 }
 0xb77   :  { %v1659_v47 = vmul.f32 %v1655_v57, %v1555_v2  ;;  %1661 = vst [vmem:[%s3019_s12 + $0x8] sm:$0xff] %v1657_v14 }
 0xb78   :  { %1662 = vst [vmem:[%s3019_s12 + $0x10] sm:$0xff] %v1658_v18 }
 0xb79   :  { %1663 = vst [vmem:[%s3019_s12 + $0x18] sm:$0xff] %v1659_v47 }

// kernel: region_attention_real.3
= control target key start
LH: loop header
LB: loop body
LE: loop exit
PB: predicated region body
PF: predicated region fallthrough
CT: control target
= control target key end

     0   :  { %vm1559_vm0 = vmmov 0   ;;  %vm355_vm1 = vcmask 261120   ;;  %s1563_s25 = smov 8   ;;  %s1564_s26 = smov 32   ;;  %vm563_vm2 = vcmask 64512   ;;  %vm565_vm3 = vcmask 130048   ;;  %s2111_s1 = inlined_call_operand.vmem [shape: f32[3,128,128], index: 1, kind: input, shape index: {}]   ;;  %s2112_s0 = inlined_call_operand.vmem [shape: f32[2,18,128], index: 0, kind: input, shape index: {}]   ;;  %s2113_s2 = inlined_call_operand.vmem [shape: f32[1,128], index: 2, kind: input, shape index: {}]   ;;  %s2114_s5 = inlined_call_operand.vmem [shape: f32[128,8], index: 5, kind: input, shape index: {}]   ;;  %s2115_s4 = inlined_call_operand.vmem [shape: f32[1,8], index: 4, kind: input, shape index: {}]   ;;  %s2116_s3 = inlined_call_operand.vmem [shape: f32[1,8], index: 3, kind: input, shape index: {}]   ;;  %s2117_s6 = inlined_call_operand.vmem [shape: f32[32,128], index: 6, kind: output, shape index: {}]  }
   0x1   :  { %v1012_v0 = vld [vmem:[%s2111_s1 + $0x80] sm:$0xff]  ;;  %v1013_v1 = vld [vmem:[%s2111_s1 + $0x88] sm:$0xff]  ;;  %v1014_v2 = vld [vmem:[%s2111_s1 + $0x90] sm:$0xff]  ;;  %s1565_s27 = smov 16   ;;  %s1566_s28 = smov 48   ;;  %vm567_vm4 = vcmask 195584  }
   0x2   :  { %v1357_v3 = vpack.c.bf16 %v1013_v1, %v1012_v0  ;;  %v1015_v4 = vld [vmem:[%s2111_s1 + $0x98] sm:$0xff]  ;;  %v1016_v6 = vld [vmem:[%s2111_s1 + $0xa0] sm:$0xff]  ;;  %v1017_v7 = vld [vmem:[%s2111_s1 + $0xa8] sm:$0xff]  ;;  %s1567_s29 = smov 40   ;;  %s1568_s30 = smov 64   ;;  %vm570_vm5 = vcmask 326656  }
   0x3   :  { %v1361_v5 = vpack.c.bf16 %v1015_v4, %v1014_v2  ;;  %v1365_v8 = vpack.c.bf16 %v1017_v7, %v1016_v6  ;;  %v43_v9 = vld [vmem:[%s2112_s0 + $0x1] sm:$0xff]  ;;  %v1018_v10 = vld [vmem:[%s2111_s1 + $0xb0] sm:$0xff]  ;;  %v1019_v11 = vld [vmem:[%s2111_s1 + $0xb8] sm:$0xff]  ;;  %s1569_s7 = smov 56   ;;  %s1570_s8 = smov 80   ;;  %vm572_vm6 = vcmask 392192  }
   0x4   :  { %1358 = vmatprep.subr.bf16.mxu0 %v1357_v3  ;;  %1183 = vmatprep.mubr.f32.mxu0 %v43_v9  ;;  %v1369_v12 = vpack.c.bf16 %v1019_v11, %v1018_v10  ;;  %v1020_v13 = vld [vmem:[%s2111_s1 + $0xc0] sm:$0xff]  ;;  %v1021_v14 = vld [vmem:[%s2111_s1 + $0xc8] sm:$0xff]  ;;  %v1022_v16 = vld [vmem:[%s2111_s1 + $0xd0] sm:$0xff]  ;;  %s1571_s9 = smov 72   ;;  %s1572_s10 = smov 96   ;;  %vm574_vm7 = vcmask 457728  }
   0x5   :  { %1360 = vmatpush3.bf16.msra.mxu0 %v1357_v3  ;;  %v1373_v15 = vpack.c.bf16 %v1021_v14, %v1020_v13  ;;  %v1023_v17 = vld [vmem:[%s2111_s1 + $0xd8] sm:$0xff]  ;;  %v1024_v19 = vld [vmem:[%s2111_s1 + $0xe0] sm:$0xff]  ;;  %v1025_v20 = vld [vmem:[%s2111_s1 + $0xe8] sm:$0xff]  ;;  %s1573_s11 = smov 88   ;;  %s1574_s12 = smov 112   ;;  %vm576_vm8 = vcmask 523264  }
   0x6   :  { %1362 = vmatprep.subr.bf16.mxu0 %v1361_v5  ;;  %v1377_v18 = vpack.c.bf16 %v1023_v17, %v1022_v16  ;;  %v1381_v21 = vpack.c.bf16 %v1025_v20, %v1024_v19  ;;  %v1026_v22 = vld [vmem:[%s2111_s1 + $0xf0] sm:$0xff]  ;;  %v1027_v23 = vld [vmem:[%s2111_s1 + $0xf8] sm:$0xff]  ;;  %v27_v25 = vld [vmem:[%s2111_s1] sm:$0xff]  ;;  %v1558_v20 = vmov 0.0|0.0   ;;  %s1575_s13 = smov 104   ;;  %s1576_s16 = smov 120  }
   0x7   :  { %v1385_v24 = vpack.c.bf16 %v1027_v23, %v1026_v22  ;;  %v28_v26 = vld [vmem:[%s2111_s1 + $0x8] sm:$0xff]  ;;  %v29_v28 = vld [vmem:[%s2111_s1 + $0x10] sm:$0xff]  ;;  %v30_v29 = vld [vmem:[%s2111_s1 + $0x18] sm:$0xff]  ;;  %1453 = vmatprep.subr.bf16.mxu1 %v1558_v20  ;;  %vm578_vm9 = vcmask 588800   ;;  %vm580_vm10 = vcmask 654336   ;;  %vm582_vm11 = vcmask 719872  }
   0x8   :  { %v1389_v27 = vpack.c.bf16 %v28_v26, %v27_v25  ;;  %v44_v30 = vld [vmem:[%s2112_s0 + $0x9] sm:$0xff]  ;;  %v1393_v31 = vpack.c.bf16 %v30_v29, %v29_v28  ;;  %v45_v32 = vld [vmem:[%s2112_s0 + $0x19] sm:$0xff]  ;;  %v46_v35 = vld [vmem:[%s2112_s0 + $0x21] sm:$0xff]  ;;  %vm584_vm12 = vcmask 785408   ;;  %vm586_vm13 = vcmask 850944  }
   0x9   :  { %1364 = vmatpush3.bf16.msra.mxu0 %v1361_v5  ;;  %v31_v33 = vld [vmem:[%s2111_s1 + $0x20] sm:$0xff]  ;;  %v32_v34 = vld [vmem:[%s2111_s1 + $0x28] sm:$0xff]  ;;  %v33_v38 = vld [vmem:[%s2111_s1 + $0x30] sm:$0xff]  ;;  %vm588_vm14 = vcmask 916480   ;;  %vm590_vm15 = vcmask 982016  }
   0xa   :  { %1366 = vmatprep.subr.bf16.mxu0 %v1365_v8  ;;  %v1397_v36 = vpack.c.bf16 %v32_v34, %v31_v33  ;;  %v23_v37 = vld [vmem:[%s2112_s0] sm:$0xff]  ;;  %v34_v39 = vld [vmem:[%s2111_s1 + $0x38] sm:$0xff]  ;;  %v36_v42 = vld [vmem:[%s2111_s1 + $0x48] sm:$0xff] }
   0xb   :  { %v1401_v40 = vpack.c.bf16 %v34_v39, %v33_v38  ;;  %v35_v41 = vld [vmem:[%s2111_s1 + $0x40] sm:$0xff]  ;;  %v37_v44 = vld [vmem:[%s2111_s1 + $0x50] sm:$0xff]  ;;  %v38_v45 = vld [vmem:[%s2111_s1 + $0x58] sm:$0xff]  ;;  %v1561_v38 = vmov 1.0  }
   0xc   :  { %v1405_v43 = vpack.c.bf16 %v36_v42, %v35_v41  ;;  %v1409_v46 = vpack.c.bf16 %v38_v45, %v37_v44  ;;  %v39_v47 = vld [vmem:[%s2111_s1 + $0x60] sm:$0xff]  ;;  %v40_v48 = vld [vmem:[%s2111_s1 + $0x68] sm:$0xff]  ;;  %v41_v50 = vld [vmem:[%s2111_s1 + $0x70] sm:$0xff] }
   0xd   :  { %1368 = vmatpush3.bf16.msra.mxu0 %v1365_v8  ;;  %v1413_v49 = vpack.c.bf16 %v40_v48, %v39_v47  ;;  %v42_v51 = vld [vmem:[%s2111_s1 + $0x78] sm:$0xff]  ;;  %v1028_v53 = vld [vmem:[%s2111_s1 + $0x100] sm:$0xff]  ;;  %v1029_v54 = vld [vmem:[%s2111_s1 + $0x108] sm:$0xff] }
   0xe   :  { %1370 = vmatprep.subr.bf16.mxu0 %v1369_v12  ;;  %v1417_v52 = vpack.c.bf16 %v42_v51, %v41_v50  ;;  %v1421_v55 = vpack.c.bf16 %v1029_v54, %v1028_v53  ;;  %v1030_v56 = vld [vmem:[%s2111_s1 + $0x110] sm:$0xff]  ;;  %v1031_v57 = vld [vmem:[%s2111_s1 + $0x118] sm:$0xff]  ;;  %v24_v58 = vld [vmem:[%s2112_s0 + $0x8] sm:$0xff] }
   0xf   :  { %v1425_v59 = vpack.c.bf16 %v1031_v57, %v1030_v56  ;;  %v25_v60 = vld [vmem:[%s2112_s0 + $0x18] sm:$0xff]  ;;  %v1032_v61 = vld [vmem:[%s2111_s1 + $0x120] sm:$0xff]  ;;  %v1033_v62 = vld [vmem:[%s2111_s1 + $0x128] sm:$0xff] }
  0x10   :  { %v26_v63 = vld [vmem:[%s2112_s0 + $0x20] sm:$0xff]  ;;  %v1429_v0 = vpack.c.bf16 %v1033_v62, %v1032_v61  ;;  %v1034_v2 = vld [vmem:[%s2111_s1 + $0x130] sm:$0xff]  ;;  %v1035_v3 = vld [vmem:[%s2111_s1 + $0x138] sm:$0xff] }
  0x11   :  { %1372 = vmatpush3.bf16.msra.mxu0 %v1369_v12  ;;  %v234_v1 = vld [vmem:[%s2112_s0 + $0x2] sm:$0xff]  ;;  %v1433_v4 = vpack.c.bf16 %v1035_v3, %v1034_v2  ;;  %v1038_v8 = vld [vmem:[%s2111_s1 + $0x150] sm:$0xff]  ;;  %v1039_v9 = vld [vmem:[%s2111_s1 + $0x158] sm:$0xff] }
  0x12   :  { %1374 = vmatprep.subr.bf16.mxu0 %v1373_v15  ;;  %v1036_v5 = vld [vmem:[%s2111_s1 + $0x140] sm:$0xff]  ;;  %v1037_v6 = vld [vmem:[%s2111_s1 + $0x148] sm:$0xff]  ;;  %v1441_v10 = vpack.c.bf16 %v1039_v9, %v1038_v8  ;;  %v1042_v14 = vld [vmem:[%s2111_s1 + $0x170] sm:$0xff] }
  0x13   :  { %v1437_v7 = vpack.c.bf16 %v1037_v6, %v1036_v5  ;;  %v1040_v11 = vld [vmem:[%s2111_s1 + $0x160] sm:$0xff]  ;;  %v1041_v12 = vld [vmem:[%s2111_s1 + $0x168] sm:$0xff]  ;;  %v436_v44 = vld [vmem:[%s2114_s5 + $0x38] sm:$0xff] }
  0x14   :  { %v1445_v13 = vpack.c.bf16 %v1041_v12, %v1040_v11  ;;  %v235_v17 = vld [vmem:[%s2112_s0 + $0xa] sm:$0xff]  ;;  %v237_v19 = vld [vmem:[%s2112_s0 + $0x22] sm:$0xff]  ;;  %v1044_v22 = vld [vmem:[%s2113_s2] ss:$0 sm:$0xff] }
  0x15   :  { %1376 = vmatpush3.bf16.msra.mxu0 %v1373_v15  ;;  %v1043_v15 = vld [vmem:[%s2111_s1 + $0x178] sm:$0xff]  ;;  %v430_v33 = vld [vmem:[%s2114_s5 + $0x8] sm:$0xff] }
  0x16   :  { %1378 = vmatprep.subr.bf16.mxu0 %v1377_v18  ;;  %v1449_v16 = vpack.c.bf16 %v1043_v15, %v1042_v14  ;;  %v434_v41 = vld [vmem:[%s2114_s5 + $0x28] sm:$0xff]  ;;  %v440_v50 = vld [vmem:[%s2114_s5 + $0x58] sm:$0xff] }
  0x17   :  { %v438_v47 = vld [vmem:[%s2114_s5 + $0x48] sm:$0xff]  ;;  %v444_v56 = vld [vmem:[%s2114_s5 + $0x78] sm:$0xff] }
  0x18   :  { %v442_v53 = vld [vmem:[%s2114_s5 + $0x68] sm:$0xff] }
  0x19   :  { %1380 = vmatpush3.bf16.msra.mxu0 %v1377_v18  ;;  %v236_v18 = vld [vmem:[%s2112_s0 + $0x1a] sm:$0xff] }
  0x1a   :  { %1382 = vmatprep.subr.bf16.mxu0 %v1381_v21 }
  0x1d   :  { %1384 = vmatpush3.bf16.msra.mxu0 %v1381_v21  ;;  %v1560_v21 = vmov 0.0  }
  0x1e   :  { %1386 = vmatprep.subr.bf16.mxu0 %v1385_v24  ;;  %1273 = vmatprep.mubr.msk.f32.mxu1 %vm1559_vm0, %v1560_v21 }
  0x21   :  { %1388 = vmatpush3.bf16.msra.mxu0 %v1385_v24 }
  0x22   :  { %1390 = vmatprep.subr.bf16.mxu0 %v1389_v27 }
  0x24   :  { %1184 = vmatmul.mubr.f32.vlgmr.msra.gmra.mrb[0].mxu0 %v44_v30 }
  0x25   :  { %1392 = vmatpush3.bf16.msra.mxu0 %v1389_v27  ;;  %1186 = vmatprep.mubr.f32.mxu0 %v45_v32  ;;  %v429_v32 = vld [vmem:[%s2114_s5] sm:$0xff] }
  0x26   :  { %1394 = vmatprep.subr.bf16.mxu0 %v1393_v31 }
  0x28   :  { %1187 = vmatmul.mubr.f32.gmra.mrb[2].mxu0 %v46_v35  ;;  %v1817_v35 = vpack.c.bf16 %v430_v33, %v429_v32 }
  0x29   :  { %1396 = vmatpush3.bf16.msra.mxu0 %v1393_v31  ;;  %1221 = vmatprep.mubr.f32.mxu0 %v23_v37  ;;  %v432_v37 = vld [vmem:[%s2114_s5 + $0x18] sm:$0xff] }
  0x2a   :  { %1398 = vmatprep.subr.bf16.mxu0 %v1397_v36 }
  0x2d   :  { %1400 = vmatpush3.bf16.msra.mxu0 %v1397_v36  ;;  %v431_v36 = vld [vmem:[%s2114_s5 + $0x10] sm:$0xff] }
  0x2e   :  { %1402 = vmatprep.subr.bf16.mxu0 %v1401_v40  ;;  %v1829_v39 = vpack.c.bf16 %v432_v37, %v431_v36 }
  0x31   :  { %1404 = vmatpush3.bf16.msra.mxu0 %v1401_v40  ;;  %v433_v40 = vld [vmem:[%s2114_s5 + $0x20] sm:$0xff] }
  0x32   :  { %1406 = vmatprep.subr.bf16.mxu0 %v1405_v43  ;;  %v1841_v42 = vpack.c.bf16 %v434_v41, %v433_v40 }
  0x35   :  { %1408 = vmatpush3.bf16.msra.mxu0 %v1405_v43  ;;  %v435_v43 = vld [vmem:[%s2114_s5 + $0x30] sm:$0xff] }
  0x36   :  { %1410 = vmatprep.subr.bf16.mxu0 %v1409_v46  ;;  %v1851_v45 = vpack.c.bf16 %v436_v44, %v435_v43 }
  0x39   :  { %1412 = vmatpush3.bf16.msra.mxu0 %v1409_v46  ;;  %v437_v46 = vld [vmem:[%s2114_s5 + $0x40] sm:$0xff] }
  0x3a   :  { %1414 = vmatprep.subr.bf16.mxu0 %v1413_v49  ;;  %v1861_v48 = vpack.c.bf16 %v438_v47, %v437_v46 }
  0x3d   :  { %1416 = vmatpush3.bf16.msra.mxu0 %v1413_v49  ;;  %v439_v49 = vld [vmem:[%s2114_s5 + $0x50] sm:$0xff] }
  0x3e   :  { %1418 = vmatprep.subr.bf16.mxu0 %v1417_v52  ;;  %v1871_v51 = vpack.c.bf16 %v440_v50, %v439_v49 }
  0x41   :  { %1420 = vmatpush3.bf16.msra.mxu0 %v1417_v52  ;;  %v441_v52 = vld [vmem:[%s2114_s5 + $0x60] sm:$0xff] }
  0x42   :  { %1422 = vmatprep.subr.bf16.mxu0 %v1421_v55  ;;  %v1881_v54 = vpack.c.bf16 %v442_v53, %v441_v52 }
  0x44   :  { %1222 = vmatmul.mubr.f32.vlgmr.msra.gmra.mrb[0].mxu0 %v24_v58 }
  0x45   :  { %1424 = vmatpush3.bf16.msra.mxu0 %v1421_v55  ;;  %1224 = vmatprep.mubr.f32.mxu0 %v25_v60  ;;  %v443_v55 = vld [vmem:[%s2114_s5 + $0x70] sm:$0xff]  ;;  %s1562_s5 = smov 24  }
  0x46   :  { %1426 = vmatprep.subr.bf16.mxu0 %v1425_v59  ;;  %v1891_v57 = vpack.c.bf16 %v444_v56, %v443_v55 }
  0x48   :  { %1225 = vmatmul.mubr.f32.gmra.mrb[2].mxu0 %v26_v63  ;;  %v592_v63 = vlaneseq }
  0x49   :  { %1428 = vmatpush3.bf16.msra.mxu0 %v1425_v59  ;;  %1259 = vmatprep.mubr.f32.mxu0 %v234_v1  ;;  %v1915_v1 = vld [vmem:[%s2115_s4] sm:$0x1] }
  0x4a   :  { %1430 = vmatprep.subr.bf16.mxu0 %v1429_v0 }
  0x4d   :  { %1432 = vmatpush3.bf16.msra.mxu0 %v1429_v0  ;;  %v593_v0 = vshrl.u32 %v592_v63, 7 }
  0x4e   :  { %1434 = vmatprep.subr.bf16.mxu0 %v1433_v4 }
  0x4f   :  { %v1917_v2 = vsub.s32 0, %v593_v0 }
  0x51   :  { %1436 = vmatpush3.bf16.msra.mxu0 %v1433_v4  ;;  %v1922_v3 = vrot.slane %v1915_v1, %v1917_v2 }
  0x52   :  { %1438 = vmatprep.subr.bf16.mxu0 %v1437_v7 }
  0x55   :  { %1440 = vmatpush3.bf16.msra.mxu0 %v1437_v7 }
  0x56   :  { %1442 = vmatprep.subr.bf16.mxu0 %v1441_v10 }
  0x59   :  { %1444 = vmatpush3.bf16.msra.mxu0 %v1441_v10 }
  0x5a   :  { %1446 = vmatprep.subr.bf16.mxu0 %v1445_v13 }
  0x5d   :  { %1448 = vmatpush3.bf16.msra.mxu0 %v1445_v13 }
  0x5e   :  { %1450 = vmatprep.subr.bf16.mxu0 %v1449_v16 }
  0x61   :  { %1452 = vmatpush3.bf16.msra.mxu0 %v1449_v16 }
  0x64   :  { %1260 = vmatmul.mubr.f32.vlgmr.msra.gmra.mrb[0].mxu0 %v235_v17 }
  0x65   :  { %1262 = vmatprep.mubr.f32.mxu0 %v236_v18 }
  0x68   :  { %1263 = vmatmul.mubr.f32.gmra.mrb[2].mxu0 %v237_v19 }
 0x137   :  { %v1261_v23 = vpop.f32.mrb[0].mxu0 }
 0x138   :  { %v1798_v24 = vadd.f32 %v1261_v23, %v1044_v22  ;;  %v321_v25 = vpop.f32.mrb[1].mxu0 }
 0x139   :  { %v1800_v26 = vadd.f32 %v1044_v22, %v321_v25 }
 0x13b   :  { %v1264_v27 = vpop.f32.mrb[2].mxu0  ;;  %v1454_v28 = vpack.c.bf16 %v1798_v24, %v1800_v26 }
 0x13c   :  { %v1804_v29 = vadd.f32 %v1264_v27, %v1044_v22  ;;  %v331_v30 = vpop.f32.mrb[3].mxu0 }
 0x13d   :  { %v1806_v31 = vadd.f32 %v1044_v22, %v331_v30  ;;  %1455 = vmatpush3.bf16.msra.mxu1 %v1454_v28 }
 0x13e   :  { %1456 = vmatprep.subr.bf16.mxu1 %v1558_v20 }
 0x13f   :  { %v1457_v34 = vpack.c.bf16 %v1804_v29, %v1806_v31 }
 0x141   :  { %1458 = vmatpush3.bf16.msra.mxu1 %v1457_v34 }
 0x142   :  { %1459 = vmatprep.subr.bf16.mxu1 %v1558_v20 }
 0x144   :  { %1274 = vmatmul.mubr.msk.f32.vlgmr.msra.gmra.mrb[0].mxu1 %vm355_vm1, %v1561_v38 }
 0x145   :  { %1461 = vmatpush3.bf16.msra.mxu1 %v1817_v35  ;;  %1308 = vmatprep.mubr.msk.f32.mxu1 %vm1559_vm0, %v1560_v21 }
 0x146   :  { %1462 = vmatprep.subr.bf16.mxu1 %v1558_v20 }
 0x149   :  { %1464 = vmatpush3.bf16.msra.mxu1 %v1829_v39 }
 0x14a   :  { %1465 = vmatprep.subr.bf16.mxu1 %v1558_v20 }
 0x14d   :  { %1467 = vmatpush3.bf16.msra.mxu1 %v1841_v42 }
 0x14e   :  { %1468 = vmatprep.subr.bf16.mxu1 %v1558_v20 }
 0x151   :  { %1470 = vmatpush3.bf16.msra.mxu1 %v1851_v45 }
 0x152   :  { %1471 = vmatprep.subr.bf16.mxu1 %v1558_v20 }
 0x155   :  { %1473 = vmatpush3.bf16.msra.mxu1 %v1861_v48 }
 0x156   :  { %1474 = vmatprep.subr.bf16.mxu1 %v1558_v20 }
 0x159   :  { %1476 = vmatpush3.bf16.msra.mxu1 %v1871_v51 }
 0x15a   :  { %1477 = vmatprep.subr.bf16.mxu1 %v1558_v20 }
 0x15d   :  { %1479 = vmatpush3.bf16.msra.mxu1 %v1881_v54 }
 0x15e   :  { %1480 = vmatprep.subr.bf16.mxu1 %v1558_v20 }
 0x161   :  { %1482 = vmatpush3.bf16.msra.mxu1 %v1891_v57 }
 0x162   :  { %1483 = vmatprep.subr.bf16.mxu1 %v1558_v20 }
 0x217   :  { %v425_v58 = vpop.f32.mrb[0].mxu1 }
 0x218   :  { %v1275_v59 = vpop.f32.mrb[1].mxu1  ;;  %1309 = vmatmul.mubr.f32.vlgmr.msra.gmra.mrb[2].mxu1 %v425_v58 }
 0x219   :  { %1319 = vmatprep.mubr.msk.f32.mxu1 %vm1559_vm0, %v1560_v21 }
 0x2eb   :  { %v511_v60 = vpop.f32.mrb[2].mxu1 }
 0x2ec   :  { %v516_v61 = vmul.f32 0.001953125, %v511_v60  ;;  %v1310_v62 = vpop.f32.mrb[3].mxu1 }
 0x2ee   :  { %524 = vrot.lane.b32.xlu1 %v516_v61, %s1562_s5  ;;  %518 = vrot.lane.b32.xlu0 %v516_v61, %s1563_s25 }
 0x2f2   :  { %527 = vrot.lane.b32.xlu1 %v516_v61, %s1564_s26  ;;  %521 = vrot.lane.b32.xlu0 %v516_v61, %s1565_s27 }
 0x2f6   :  { %533 = vrot.lane.b32.xlu1 %v516_v61, %s1566_s28  ;;  %530 = vrot.lane.b32.xlu0 %v516_v61, %s1567_s29 }
 0x2fa   :  { %539 = vrot.lane.b32.xlu1 %v516_v61, %s1568_s30  ;;  %536 = vrot.lane.b32.xlu0 %v516_v61, %s1569_s7 }
 0x2fe   :  { %545 = vrot.lane.b32.xlu1 %v516_v61, %s1570_s8  ;;  %542 = vrot.lane.b32.xlu0 %v516_v61, %s1571_s9 }
 0x302   :  { %551 = vrot.lane.b32.xlu1 %v516_v61, %s1572_s10  ;;  %548 = vrot.lane.b32.xlu0 %v516_v61, %s1573_s11 }
 0x306   :  { %557 = vrot.lane.b32.xlu1 %v516_v61, %s1574_s12  ;;  %554 = vrot.lane.b32.xlu0 %v516_v61, %s1575_s13 }
 0x30a   :  { %560 = vrot.lane.b32.xlu0 %v516_v61, %s1576_s16 }
 0x30e   :  { %828 = vrot.lane.b32.xlu0 %v1922_v3, %s1563_s25 }
 0x312   :  { %831 = vrot.lane.b32.xlu0 %v1922_v3, %s1565_s27 }
 0x316   :  { %834 = vrot.lane.b32.xlu0 %v1922_v3, %s1562_s5 }
 0x31a   :  { %837 = vrot.lane.b32.xlu0 %v1922_v3, %s1564_s26 }
 0x31e   :  { %840 = vrot.lane.b32.xlu0 %v1922_v3, %s1567_s29 }
 0x322   :  { %843 = vrot.lane.b32.xlu0 %v1922_v3, %s1566_s28 }
 0x326   :  { %846 = vrot.lane.b32.xlu0 %v1922_v3, %s1569_s7 }
 0x32a   :  { %849 = vrot.lane.b32.xlu0 %v1922_v3, %s1568_s30 }
 0x32e   :  { %852 = vrot.lane.b32.xlu0 %v1922_v3, %s1571_s9 }
 0x332   :  { %855 = vrot.lane.b32.xlu0 %v1922_v3, %s1570_s8 }
 0x360   :  { %v525_v4 = vpop.permute.xlu1 %524  ;;  %v519_v5 = vpop.permute.xlu0 %518 }
 0x361   :  { %v564_v6 = vsel %vm563_vm2, %v516_v61, %v519_v5 }
 0x364   :  { %v528_v7 = vpop.permute.xlu1 %527  ;;  %v522_v8 = vpop.permute.xlu0 %521 }
 0x365   :  { %v566_v9 = vsel %vm565_vm3, %v564_v6, %v522_v8 }
 0x366   :  { %v568_v10 = vsel %vm567_vm4, %v566_v9, %v525_v4 }
 0x367   :  { %v569_v11 = vsel %vm355_vm1, %v568_v10, %v528_v7 }
 0x368   :  { %v534_v12 = vpop.permute.xlu1 %533  ;;  %v531_v13 = vpop.permute.xlu0 %530 }
 0x369   :  { %v571_v14 = vsel %vm570_vm5, %v569_v11, %v531_v13 }
 0x36a   :  { %v573_v16 = vsel %vm572_vm6, %v571_v14, %v534_v12 }
 0x36c   :  { %v540_v15 = vpop.permute.xlu1 %539  ;;  %v537_v17 = vpop.permute.xlu0 %536 }
 0x36d   :  { %v575_v18 = vsel %vm574_vm7, %v573_v16, %v537_v17 }
 0x36e   :  { %v577_v22 = vsel %vm576_vm8, %v575_v18, %v540_v15 }
 0x370   :  { %v546_v19 = vpop.permute.xlu1 %545  ;;  %v543_v23 = vpop.permute.xlu0 %542 }
 0x371   :  { %v579_v25 = vsel %vm578_vm9, %v577_v22, %v543_v23 }
 0x372   :  { %v581_v28 = vsel %vm580_vm10, %v579_v25, %v546_v19 }
 0x374   :  { %v552_v27 = vpop.permute.xlu1 %551  ;;  %v549_v30 = vpop.permute.xlu0 %548 }
 0x375   :  { %v583_v32 = vsel %vm582_vm11, %v581_v28, %v549_v30 }
 0x376   :  { %v585_v33 = vsel %vm584_vm12, %v583_v32, %v552_v27 }
 0x378   :  { %v555_v34 = vpop.permute.xlu0 %554  ;;  %v558_v36 = vpop.permute.xlu1 %557 }
 0x379   :  { %v587_v37 = vsel %vm586_vm13, %v585_v33, %v555_v34 }
 0x37a   :  { %v589_v40 = vsel %vm588_vm14, %v587_v37, %v558_v36 }
 0x37c   :  { %v561_v41 = vpop.permute.xlu0 %560 }
 0x37d   :  { %v591_v43 = vsel %vm590_vm15, %v589_v40, %v561_v41 }
 0x37e   :  { %v595_v44 = vrot.slane %v591_v43, %v1917_v2 }
 0x380   :  { %v1961_v46 = vsub.f32 %v1800_v26, %v595_v44  ;;  %v1964_v47 = vsub.f32 %v1798_v24, %v595_v44  ;;  %v1967_v49 = vsub.f32 %v1806_v31, %v595_v44  ;;  %v1970_v50 = vsub.f32 %v1804_v29, %v595_v44 }
 0x382   :  { %v600_v52 = vmul.f32 %v1961_v46, %v1961_v46  ;;  %v601_v53 = vmul.f32 %v1964_v47, %v1964_v47  ;;  %v602_v26 = vmul.f32 %v1967_v49, %v1967_v49  ;;  %v603_v24 = vmul.f32 %v1970_v50, %v1970_v50 }
 0x384   :  { %v1484_v55 = vpack.c.bf16 %v601_v53, %v600_v52  ;;  %v1487_v31 = vpack.c.bf16 %v603_v24, %v602_v26 }
 0x386   :  { %1485 = vmatpush3.bf16.msra.mxu1 %v1484_v55 }
 0x387   :  { %1486 = vmatprep.subr.bf16.mxu1 %v1558_v20 }
 0x38a   :  { %1488 = vmatpush3.bf16.msra.mxu1 %v1487_v31 }
 0x38b   :  { %1489 = vmatprep.subr.bf16.mxu1 %v1558_v20 }
 0x38d   :  { %1320 = vmatmul.mubr.msk.f32.vlgmr.msra.gmra.mrb[4].mxu1 %vm355_vm1, %v1561_v38 }
 0x38e   :  { %1491 = vmatpush3.bf16.msra.mxu1 %v1817_v35  ;;  %1354 = vmatprep.mubr.msk.f32.mxu1 %vm1559_vm0, %v1560_v21 }
 0x38f   :  { %1492 = vmatprep.subr.bf16.mxu1 %v1558_v20 }
 0x392   :  { %1494 = vmatpush3.bf16.msra.mxu1 %v1829_v39 }
 0x393   :  { %1495 = vmatprep.subr.bf16.mxu1 %v1558_v20 }
 0x396   :  { %1497 = vmatpush3.bf16.msra.mxu1 %v1841_v42 }
 0x397   :  { %1498 = vmatprep.subr.bf16.mxu1 %v1558_v20 }
 0x39a   :  { %1500 = vmatpush3.bf16.msra.mxu1 %v1851_v45  ;;  %v745_v45 = vld [vmem:[%s2116_s3] sm:$0x1] }
 0x39b   :  { %1501 = vmatprep.subr.bf16.mxu1 %v1558_v20 }
 0x39e   :  { %1503 = vmatpush3.bf16.msra.mxu1 %v1861_v48 }
 0x39f   :  { %1504 = vmatprep.subr.bf16.mxu1 %v1558_v20 }
 0x3a2   :  { %1506 = vmatpush3.bf16.msra.mxu1 %v1871_v51 }
 0x3a3   :  { %1507 = vmatprep.subr.bf16.mxu1 %v1558_v20 }
 0x3a6   :  { %1509 = vmatpush3.bf16.msra.mxu1 %v1881_v54 }
 0x3a7   :  { %1510 = vmatprep.subr.bf16.mxu1 %v1558_v20  ;;  %v829_v20 = vpop.permute.xlu0 %828 }
 0x3a8   :  { %v873_v7 = vsel %vm563_vm2, %v1915_v1, %v829_v20 }
 0x3aa   :  { %1512 = vmatpush3.bf16.msra.mxu1 %v1891_v57 }
 0x3ab   :  { %v832_v56 = vpop.permute.xlu0 %831 }
 0x3af   :  { %v835_v57 = vpop.permute.xlu0 %834 }
 0x3b3   :  { %v838_v58 = vpop.permute.xlu0 %837 }
 0x3b7   :  { %v841_v59 = vpop.permute.xlu0 %840 }
 0x3bb   :  { %v844_v61 = vpop.permute.xlu0 %843 }
 0x3bf   :  { %v847_v0 = vpop.permute.xlu0 %846 }
 0x3c3   :  { %v850_v5 = vpop.permute.xlu0 %849 }
 0x3c7   :  { %v853_v9 = vpop.permute.xlu0 %852 }
 0x3cb   :  { %v856_v12 = vpop.permute.xlu0 %855 }
 0x460   :  { %v670_v21 = vpop.f32.mrb[4].mxu1 }
 0x461   :  { %v1321_v29 = vpop.f32.mrb[5].mxu1  ;;  %1355 = vmatmul.mubr.f32.vlgmr.msra.gmra.mrb[6].mxu1 %v670_v21 }
 0x534   :  { %v740_v35 = vpop.f32.mrb[6].mxu1 }
 0x535   :  { %v744_v38 = vmul.f32 0.001953125, %v740_v35  ;;  %v1356_v39 = vpop.f32.mrb[7].mxu1 }
 0x537   :  { %v746_v42 = vadd.f32 1e-05, %v744_v38 }
 0x539   :  { %1540 = vrsqrt.f32 %v746_v42 }
 0x543   :  { %v1541_v48 = vpop.eup %1540 }
 0x544   :  { %v748_v51 = vmul.f32 %v1541_v48, %v745_v45 }
 0x546   :  { %v753_v54 = vrot.slane %v748_v51, %v1917_v2 }
 0x548   :  { %757 = vrot.lane.b32.xlu0 %v753_v54, %s1565_s27  ;;  %754 = vrot.lane.b32.xlu1 %v753_v54, %s1563_s25 }
 0x54c   :  { %760 = vrot.lane.b32.xlu1 %v753_v54, %s1562_s5  ;;  %858 = vrot.lane.b32.xlu0 %v1922_v3, %s1573_s11 }
 0x550   :  { %763 = vrot.lane.b32.xlu1 %v753_v54, %s1564_s26  ;;  %861 = vrot.lane.b32.xlu0 %v1922_v3, %s1572_s10 }
 0x554   :  { %766 = vrot.lane.b32.xlu1 %v753_v54, %s1567_s29  ;;  %864 = vrot.lane.b32.xlu0 %v1922_v3, %s1575_s13 }
 0x558   :  { %769 = vrot.lane.b32.xlu1 %v753_v54, %s1566_s28  ;;  %870 = vrot.lane.b32.xlu0 %v1922_v3, %s1576_s16 }
 0x55c   :  { %772 = vrot.lane.b32.xlu1 %v753_v54, %s1569_s7 }
 0x560   :  { %775 = vrot.lane.b32.xlu1 %v753_v54, %s1568_s30 }
 0x564   :  { %778 = vrot.lane.b32.xlu1 %v753_v54, %s1571_s9 }
 0x568   :  { %781 = vrot.lane.b32.xlu1 %v753_v54, %s1570_s8 }
 0x56c   :  { %784 = vrot.lane.b32.xlu1 %v753_v54, %s1573_s11 }
 0x570   :  { %787 = vrot.lane.b32.xlu1 %v753_v54, %s1572_s10 }
 0x574   :  { %790 = vrot.lane.b32.xlu1 %v753_v54, %s1575_s13 }
 0x578   :  { %793 = vrot.lane.b32.xlu1 %v753_v54, %s1574_s12 }
 0x57c   :  { %796 = vrot.lane.b32.xlu1 %v753_v54, %s1576_s16 }
 0x580   :  { %867 = vrot.lane.b32.xlu1 %v1922_v3, %s1574_s12  ;;  %v874_v3 = vsel %vm565_vm3, %v873_v7, %v832_v56 }
 0x581   :  { %v875_v11 = vsel %vm567_vm4, %v874_v3, %v835_v57 }
 0x582   :  { %v876_v14 = vsel %vm355_vm1, %v875_v11, %v838_v58 }
 0x583   :  { %v877_v15 = vsel %vm570_vm5, %v876_v14, %v841_v59 }
 0x584   :  { %v878_v18 = vsel %vm572_vm6, %v877_v15, %v844_v61 }
 0x585   :  { %v879_v22 = vsel %vm574_vm7, %v878_v18, %v847_v0 }
 0x586   :  { %v880_v28 = vsel %vm576_vm8, %v879_v22, %v850_v5 }
 0x587   :  { %v881_v34 = vsel %vm578_vm9, %v880_v28, %v853_v9 }
 0x588   :  { %v882_v44 = vsel %vm580_vm10, %v881_v34, %v856_v12 }
 0x5ba   :  { %v755_v60 = vpop.permute.xlu1 %754  ;;  %v758_v17 = vpop.permute.xlu0 %757 }
 0x5bb   :  { %v799_v1 = vsel %vm563_vm2, %v748_v51, %v755_v60 }
 0x5bc   :  { %v800_v25 = vsel %vm565_vm3, %v799_v1, %v758_v17 }
 0x5be   :  { %v761_v62 = vpop.permute.xlu1 %760  ;;  %v859_v23 = vpop.permute.xlu0 %858 }
 0x5bf   :  { %v801_v30 = vsel %vm567_vm4, %v800_v25, %v761_v62  ;;  %v883_v24 = vsel %vm582_vm11, %v882_v44, %v859_v23 }
 0x5c2   :  { %v764_v63 = vpop.permute.xlu1 %763  ;;  %v862_v40 = vpop.permute.xlu0 %861 }
 0x5c3   :  { %v802_v32 = vsel %vm355_vm1, %v801_v30, %v764_v63  ;;  %v884_v39 = vsel %vm584_vm12, %v883_v24, %v862_v40 }
 0x5c6   :  { %v767_v4 = vpop.permute.xlu1 %766  ;;  %v865_v21 = vpop.permute.xlu0 %864 }
 0x5c7   :  { %v803_v33 = vsel %vm570_vm5, %v802_v32, %v767_v4  ;;  %v885_v51 = vsel %vm586_vm13, %v884_v39, %v865_v21 }
 0x5ca   :  { %v770_v6 = vpop.permute.xlu1 %769  ;;  %v871_v48 = vpop.permute.xlu0 %870 }
 0x5cb   :  { %v804_v36 = vsel %vm572_vm6, %v803_v33, %v770_v6 }
 0x5ce   :  { %v773_v8 = vpop.permute.xlu1 %772 }
 0x5cf   :  { %v805_v41 = vsel %vm574_vm7, %v804_v36, %v773_v8 }
 0x5d2   :  { %v776_v10 = vpop.permute.xlu1 %775 }
 0x5d3   :  { %v806_v43 = vsel %vm576_vm8, %v805_v41, %v776_v10 }
 0x5d6   :  { %v779_v13 = vpop.permute.xlu1 %778 }
 0x5d7   :  { %v807_v52 = vsel %vm578_vm9, %v806_v43, %v779_v13 }
 0x5da   :  { %v782_v16 = vpop.permute.xlu1 %781 }
 0x5db   :  { %v808_v53 = vsel %vm580_vm10, %v807_v52, %v782_v16 }
 0x5de   :  { %v785_v19 = vpop.permute.xlu1 %784 }
 0x5df   :  { %v809_v26 = vsel %vm582_vm11, %v808_v53, %v785_v19 }
 0x5e2   :  { %v788_v27 = vpop.permute.xlu1 %787 }
 0x5e3   :  { %v810_v31 = vsel %vm584_vm12, %v809_v26, %v788_v27 }
 0x5e6   :  { %v791_v37 = vpop.permute.xlu1 %790 }
 0x5e7   :  { %v811_v29 = vsel %vm586_vm13, %v810_v31, %v791_v37 }
 0x5ea   :  { %v794_v55 = vpop.permute.xlu1 %793 }
 0x5eb   :  { %v812_v35 = vsel %vm588_vm14, %v811_v29, %v794_v55 }
 0x5ee   :  { %v797_v38 = vpop.permute.xlu1 %796 }
 0x5ef   :  { %v813_v42 = vsel %vm590_vm15, %v812_v35, %v797_v38 }
 0x5f0   :  { %v817_v45 = vrot.slane %v813_v42, %v1917_v2 }
 0x5f2   :  { %v868_v54 = vpop.permute.xlu1 %867  ;;  %v818_v56 = vmul.f32 %v817_v45, %v1961_v46  ;;  %v819_v58 = vmul.f32 %v817_v45, %v1964_v47  ;;  %v820_v59 = vmul.f32 %v817_v45, %v1967_v49  ;;  %v821_v60 = vmul.f32 %v817_v45, %v1970_v50 }
 0x5f3   :  { %v886_v20 = vsel %vm588_vm14, %v885_v51, %v868_v54 }
 0x5f4   :  { %v887_v57 = vsel %vm590_vm15, %v886_v20, %v871_v48 }
 0x5f5   :  { %v891_v61 = vrot.slane %v887_v57, %v1917_v2 }
 0x5f7   :  { %v2067_v62 = vadd.f32 %v891_v61, %v818_v56  ;;  %v2069_v63 = vadd.f32 %v891_v61, %v819_v58  ;;  %v2071_v0 = vadd.f32 %v891_v61, %v820_v59  ;;  %v2073_v4 = vadd.f32 %v891_v61, %v821_v60 }
 0x5f9   :  { %v2076_v46 = vmul.f32 0.70710677, %v2067_v62  ;;  %v2079_v5 = vmul.f32 0.70710677, %v2069_v63  ;;  %v2082_v47 = vmul.f32 0.70710677, %v2071_v0 }
 0x5fa   :  { %v2085_v49 = vmul.f32 0.70710677, %v2073_v4 }
 0x5fb   :  { %v904_v2 = vand.u32 2147483647, %v2076_v46  ;;  %v905_v50 = vand.u32 2147483647, %v2079_v5  ;;  %v906_v6 = vand.u32 2147483647, %v2082_v47 }
 0x5fc   :  { %v907_v7 = vand.u32 2147483647, %v2085_v49  ;;  %vm984_vm0 = vcmp.ge.f32.partialorder %v2076_v46, 0.0  ;;  %vm985_vm1 = vcmp.ge.f32.partialorder %v2079_v5, 0.0  ;;  %vm986_vm2 = vcmp.ge.f32.partialorder %v2082_v47, 0.0 }
 0x5fd   :  { %v908_v8 = vmul.f32 0.3275911, %v904_v2  ;;  %v909_v9 = vmul.f32 0.3275911, %v905_v50  ;;  %v910_v3 = vmul.f32 0.3275911, %v906_v6 }
 0x5fe   :  { %v911_v10 = vmul.f32 0.3275911, %v907_v7  ;;  %v960_v15 = vsub.f32 0.0, %v904_v2  ;;  %v961_v16 = vsub.f32 0.0, %v905_v50  ;;  %v962_v17 = vsub.f32 0.0, %v906_v6 }
 0x5ff   :  { %v912_v11 = vadd.f32 1.0, %v908_v8  ;;  %v913_v12 = vadd.f32 1.0, %v909_v9  ;;  %v914_v13 = vadd.f32 1.0, %v910_v3  ;;  %v963_v18 = vsub.f32 0.0, %v907_v7 }
 0x600   :  { %v915_v14 = vadd.f32 1.0, %v911_v10  ;;  %v964_v1 = vmul.f32 %v960_v15, %v904_v2  ;;  %v965_v25 = vmul.f32 %v961_v16, %v905_v50  ;;  %v966_v30 = vmul.f32 %v962_v17, %v906_v6 }
 0x601   :  { %1542 = vrcp.f32 %v912_v11  ;;  %v967_v36 = vmul.f32 %v963_v18, %v907_v7  ;;  %vm987_vm3 = vcmp.ge.f32.partialorder %v2085_v49, 0.0  ;;  %v898_v46 = vmul.f32 0.5, %v2071_v0 }
 0x602   :  { %1544 = vrcp.f32 %v913_v12  ;;  %v968_v41 = vmul.f32 1.442695, %v964_v1  ;;  %v970_v52 = vmul.f32 1.442695, %v965_v25  ;;  %v972_v26 = vmul.f32 1.442695, %v966_v30 }
 0x603   :  { %1546 = vrcp.f32 %v914_v13  ;;  %v974_v21 = vmul.f32 1.442695, %v967_v36  ;;  %v899_v5 = vmul.f32 0.5, %v2073_v4 }
 0x604   :  { %1548 = vrcp.f32 %v915_v14 }
 0x605   :  { %1550 = vpow2.f32 %v968_v41 }
 0x606   :  { %1552 = vpow2.f32 %v970_v52 }
 0x607   :  { %1554 = vpow2.f32 %v972_v26 }
 0x608   :  { %1556 = vpow2.f32 %v974_v21 }
 0x60b   :  { %v1543_v19 = vpop.eup %1542 }
 0x60c   :  { %v1545_v22 = vpop.eup %1544  ;;  %v924_v23 = vmul.f32 1.0614054, %v1543_v19 }
 0x60d   :  { %v1547_v27 = vpop.eup %1546  ;;  %v925_v28 = vmul.f32 1.0614054, %v1545_v22 }
 0x60e   :  { %v1549_v32 = vpop.eup %1548  ;;  %v926_v33 = vmul.f32 1.0614054, %v1547_v27  ;;  %v928_v34 = vadd.f32 -1.4531521, %v924_v23 }
 0x60f   :  { %v927_v37 = vmul.f32 1.0614054, %v1549_v32  ;;  %v929_v40 = vadd.f32 -1.4531521, %v925_v28  ;;  %v1551_v8 = vpop.eup %1550 }
 0x610   :  { %v930_v43 = vadd.f32 -1.4531521, %v926_v33  ;;  %v932_v44 = vmul.f32 %v1543_v19, %v928_v34  ;;  %v1553_v10 = vpop.eup %1552  ;;  %v896_v33 = vmul.f32 0.5, %v2067_v62 }
 0x611   :  { %v931_v53 = vadd.f32 -1.4531521, %v927_v37  ;;  %v933_v55 = vmul.f32 %v1545_v22, %v929_v40  ;;  %v1555_v13 = vpop.eup %1554  ;;  %v897_v37 = vmul.f32 0.5, %v2069_v63 }
 0x612   :  { %v934_v24 = vmul.f32 %v1547_v27, %v930_v43  ;;  %v936_v31 = vadd.f32 1.4214138, %v932_v44  ;;  %v1557_v16 = vpop.eup %1556 }
 0x613   :  { %v935_v29 = vmul.f32 %v1549_v32, %v931_v53  ;;  %v937_v35 = vadd.f32 1.4214138, %v933_v55 }
 0x614   :  { %v938_v38 = vadd.f32 1.4214138, %v934_v24  ;;  %v940_v39 = vmul.f32 %v1543_v19, %v936_v31 }
 0x615   :  { %v939_v42 = vadd.f32 1.4214138, %v935_v29  ;;  %v941_v45 = vmul.f32 %v1545_v22, %v937_v35 }
 0x616   :  { %v942_v48 = vmul.f32 %v1547_v27, %v938_v38  ;;  %v944_v51 = vadd.f32 -0.28449672, %v940_v39 }
 0x617   :  { %v943_v54 = vmul.f32 %v1549_v32, %v939_v42  ;;  %v945_v20 = vadd.f32 -0.28449672, %v941_v45 }
 0x618   :  { %v946_v56 = vadd.f32 -0.28449672, %v942_v48  ;;  %v948_v57 = vmul.f32 %v1543_v19, %v944_v51 }
 0x619   :  { %v947_v58 = vadd.f32 -0.28449672, %v943_v54  ;;  %v949_v59 = vmul.f32 %v1545_v22, %v945_v20 }
 0x61a   :  { %v950_v60 = vmul.f32 %v1547_v27, %v946_v56  ;;  %v952_v61 = vadd.f32 0.2548296, %v948_v57 }
 0x61b   :  { %v951_v2 = vmul.f32 %v1549_v32, %v947_v58  ;;  %v953_v50 = vadd.f32 0.2548296, %v949_v59 }
 0x61c   :  { %v954_v6 = vadd.f32 0.2548296, %v950_v60  ;;  %v956_v7 = vmul.f32 %v1543_v19, %v952_v61 }
 0x61d   :  { %v955_v9 = vadd.f32 0.2548296, %v951_v2  ;;  %v957_v3 = vmul.f32 %v1545_v22, %v953_v50 }
 0x61e   :  { %v958_v11 = vmul.f32 %v1547_v27, %v954_v6  ;;  %v976_v12 = vmul.f32 %v1551_v8, %v956_v7 }
 0x61f   :  { %v959_v14 = vmul.f32 %v1549_v32, %v955_v9  ;;  %v977_v15 = vmul.f32 %v1553_v10, %v957_v3 }
 0x620   :  { %v978_v17 = vmul.f32 %v1555_v13, %v958_v11  ;;  %v980_v18 = vsub.f32 1.0, %v976_v12 }
 0x621   :  { %v979_v1 = vmul.f32 %v1557_v16, %v959_v14  ;;  %v981_v23 = vsub.f32 1.0, %v977_v15 }
 0x622   :  { %v982_v25 = vsub.f32 1.0, %v978_v17  ;;  %v988_v28 = vsub.f32 0.0, %v980_v18 }
 0x623   :  { %v983_v30 = vsub.f32 1.0, %v979_v1  ;;  %v989_v19 = vsub.f32 0.0, %v981_v23 }
 0x624   :  { %v990_v22 = vsub.f32 0.0, %v982_v25  ;;  %v992_v27 = vsel %vm984_vm0, %v980_v18, %v988_v28 }
 0x625   :  { %v991_v32 = vsub.f32 0.0, %v983_v30  ;;  %v993_v34 = vsel %vm985_vm1, %v981_v23, %v989_v19  ;;  %v996_v36 = vadd.f32 1.0, %v992_v27 }
 0x626   :  { %v994_v40 = vsel %vm986_vm2, %v982_v25, %v990_v22  ;;  %v997_v41 = vadd.f32 1.0, %v993_v34 }
 0x627   :  { %v995_v43 = vsel %vm987_vm3, %v983_v30, %v991_v32  ;;  %v998_v44 = vadd.f32 1.0, %v994_v40  ;;  %v1000_v62 = vmul.f32 %v996_v36, %v896_v33 }
 0x628   :  { %v999_v52 = vadd.f32 1.0, %v995_v43  ;;  %v1001_v53 = vmul.f32 %v997_v41, %v897_v37 }
 0x629   :  { %v1002_v55 = vmul.f32 %v998_v44, %v898_v46  ;;  %1004 = vst [vmem:[%s2117_s6] sm:$0xff] %v1000_v62 }
 0x62a   :  { %v1003_v47 = vmul.f32 %v999_v52, %v899_v5  ;;  %1005 = vst [vmem:[%s2117_s6 + $0x8] sm:$0xff] %v1001_v53 }
 0x62b   :  { %1006 = vst [vmem:[%s2117_s6 + $0x10] sm:$0xff] %v1002_v55 }
 0x62c   :  { %1007 = vst [vmem:[%s2117_s6 + $0x18] sm:$0xff] %v1003_v47 }

</bundles_post_ra>
